<compile_context>
chip_gen: v7x
topology: tpu7x:2x2x1
jax: 0.10.0
libtpu: 0.0.40
codegen_flags: <defaults>
</compile_context>

<pallas_src>
import jax
import jax.numpy as jnp
from jax import lax
from jax.experimental import pallas as pl
from jax.experimental.pallas import tpu as pltpu


# ----------------------------------------------------------------------------
# Kernel factory
# ----------------------------------------------------------------------------
def _make_cascade_kernel(H, W, chans, mxu_dtype, n_layers):
    """chans = (c_in, c_hid, ..., c_out), length n_layers + 1.

    Kernel ref layout (positional):
      [x_ref] + [w_i, b_i] * n_layers + [alpha_ref] + [o_ref] + [pad_i] * n_layers
    """

    def kernel(*refs):
        x_ref = refs[0]
        w_refs = [refs[1 + 2 * i] for i in range(n_layers)]
        b_refs = [refs[2 + 2 * i] for i in range(n_layers)]
        alpha_ref = refs[1 + 2 * n_layers]          # (1,1) f32 in SMEM
        o_ref = refs[2 + 2 * n_layers]              # (H, W*c_out) lane-dense
        pad_refs = list(refs[3 + 2 * n_layers:])    # padded planes, mxu_dtype

        a = alpha_ref[0, 0]

        def conv_layer(pad_ref, w_ref, b_ref):
            # One 3x3 conv = 3 dense MXU matmuls (one per kernel row dy);
            # f32 accumulation, bias folded into the accumulator init.
            acc = b_ref[...] + jnp.dot(pad_ref[0:H, :], w_ref[0],
                                       preferred_element_type=jnp.float32)
            for dy in (1, 2):
                acc = acc + jnp.dot(pad_ref[dy:dy + H, :], w_ref[dy],
                                    preferred_element_type=jnp.float32)
            return acc                               # (H, W*Cout) f32

        # Zero padded scratch planes; interiors are fully overwritten below, so
        # the untouched 1-pixel borders are the conv zero-padding (all in VMEM).
        for p in pad_refs:
            p[...] = jnp.zeros_like(p)

        c0 = chans[0]
        pad_refs[0][1:H + 1, c0:c0 + W * c0] = x_ref[...].astype(mxu_dtype)

        for i in range(n_layers):
            h = conv_layer(pad_refs[i], w_refs[i], b_refs[i])
            if i != n_layers - 1:
                h = jnp.where(h >= 0, h, a * h)      # shared PReLU
                c = chans[i + 1]
                pad_refs[i + 1][1:H + 1, c:c + W * c] = h.astype(mxu_dtype)
            else:
                o_ref[...] = h.astype(o_ref.dtype)   # lane-dense output store

    return kernel


# ----------------------------------------------------------------------------
# Weight packing (pure wrapper-side parameter preprocessing)
# ----------------------------------------------------------------------------
def _band_conv_weights(w_hwio, W):
    """(3,3,Cin,Cout) conv weights -> (3, (W+2)*Cin, W*Cout) banded matrices.

    band[dy, (w+dx)*Cin + ci, w*Cout + co] == w_hwio[dy, dx, ci, co]
    so one conv row is a single matmul: out2d[h] = sum_dy pad2d[h+dy] @ band[dy].
    """
    kh, kw, c_in, c_out = w_hwio.shape
    eye_w = jnp.eye(W, dtype=w_hwio.dtype)
    bands = []
    for dy in range(kh):
        acc = jnp.zeros(((W + kw - 1) * c_in, W * c_out), w_hwio.dtype)
        for dx in range(kw):
            blk = jnp.kron(eye_w, w_hwio[dy, dx])    # (W*Cin, W*Cout) block-diag
            acc = acc + jnp.pad(blk, ((dx * c_in, (kw - 1 - dx) * c_in), (0, 0)))
        bands.append(acc)
    return jnp.stack(bands)                           # (3, (W+2)*Cin, W*Cout)


# ----------------------------------------------------------------------------
# Wrapper
# ----------------------------------------------------------------------------
def _conv2d_cascade_impl(x_nchw, params, prelu_a, mxu_dtype=jnp.float32):
    """Forward of the Conv2d module (batchnorm=False). NCHW in / NCHW out."""
    # TODO(synk): batchnorm=True variant (BatchNorm2d after each conv) not implemented.
    n_layers = len(params)
    N, c_in, H, W = x_nchw.shape
    chans = (c_in,) + tuple(w.shape[-1] for (w, _) in params)
    c_out = chans[-1]

    # NCHW -> lane-dense (N, H, W*Cin) plane (contiguous NHWC reshape is free).
    x2d = jnp.transpose(x_nchw, (0, 2, 3, 1)).reshape(N, H, W * c_in)

    op_args = [x2d]
    in_specs = [pl.BlockSpec((None, H, W * c_in), lambda n: (n, 0, 0))]
    for (w, b) in params:
        cout = w.shape[-1]
        wb = _band_conv_weights(w, W).astype(mxu_dtype)
        bb = jnp.tile(b, W).reshape(1, W * cout).astype(jnp.float32)
        op_args += [wb, bb]
        in_specs += [pl.BlockSpec(wb.shape, lambda n: (0, 0, 0)),   # resident weights
                     pl.BlockSpec(bb.shape, lambda n: (0, 0))]

    alpha = jnp.full((1, 1), prelu_a, jnp.float32)    # runtime scalar, no recompile
    op_args.append(alpha)
    in_specs.append(pl.BlockSpec(memory_space=pltpu.MemorySpace.SMEM))

    # Per-layer padded activation planes, stored directly in the MXU dtype.
    scratch_shapes = [pltpu.VMEM((H + 2, (W + 2) * c), mxu_dtype)
                      for c in chans[:-1]]

    kernel = _make_cascade_kernel(H, W, chans, mxu_dtype, n_layers)

    out2d = pl.pallas_call(
        kernel,
        out_shape=jax.ShapeDtypeStruct((N, H, W * c_out), x_nchw.dtype),
        grid_spec=pltpu.PrefetchScalarGridSpec(
            num_scalar_prefetch=0,
            grid=(N,),
            in_specs=in_specs,
            out_specs=pl.BlockSpec((None, H, W * c_out), lambda n: (n, 0, 0)),
            scratch_shapes=scratch_shapes,
        ),
        compiler_params=pltpu.CompilerParams(
            dimension_semantics=("parallel",),        # batch elems -> both v7x TCs
        ),
    )(*op_args)

    return jnp.transpose(out2d.reshape(N, H, W, c_out), (0, 3, 1, 2))  # -> NCHW


conv2d_cascade = jax.jit(_conv2d_cascade_impl, static_argnames=("mxu_dtype",))


# ----------------------------------------------------------------------------
# Params / reference / test
# ----------------------------------------------------------------------------
def init_params(key, in_channels, out_channels, hidden_channels, n_convs=3):
    """Deterministic parameter init matching the module's layer shapes."""
    params = []
    for idx in range(n_convs):
        cin = in_channels if idx == 0 else hidden_channels
        cout = hidden_channels if idx != n_convs - 1 else out_channels
        key, kw, kb = jax.random.split(key, 3)
        bound = 1.0 / jnp.sqrt(cin * 3 * 3)
        w = jax.random.uniform(kw, (3, 3, cin, cout), jnp.float32, -bound, bound)
        b = jax.random.uniform(kb, (cout,), jnp.float32, -bound, bound)
        params.append((w, b))
    prelu_a = 0.25  # nn.PReLU() default init; single shared parameter
    return params, prelu_a


def _reference(x_nchw, params, prelu_a):
    """Pure-JAX reference for correctness check."""
    n_convs = len(params)
    x = x_nchw
    for idx, (w, b) in enumerate(params):
        x = lax.conv_general_dilated(
            x, w, window_strides=(1, 1), padding=((1, 1), (1, 1)),
            dimension_numbers=("NCHW", "HWIO", "NCHW"),
        ) + b.reshape(1, -1, 1, 1)
        if idx != n_convs - 1:
            x = jnp.where(x >= 0, x, prelu_a * x)
    return x


if __name__ == "__main__":
    key = jax.random.PRNGKey(0)
    kx, kp = jax.random.split(key)

    in_channels, out_channels, hidden_channels = 4, 4, 8
    N, H, W = 2, 16, 16

    x = jax.random.normal(kx, (N, in_channels, H, W), jnp.float32)
    params, prelu_a = init_params(kp, in_channels, out_channels, hidden_channels)

    ref = _reference(x, params, prelu_a)

    # Exact-parity path: f32 MXU operands.
    out = jax.block_until_ready(conv2d_cascade(x, params, prelu_a))
    assert out.shape == (N, out_channels, H, W)
    assert jnp.allclose(out, ref, atol=1e-4, rtol=1e-4)

    # Throughput path (v6e/v7x): bf16 MXU operands, f32 accumulate.
    out_bf16 = jax.block_until_ready(
        conv2d_cascade(x, params, prelu_a, mxu_dtype=jnp.bfloat16))
    assert jnp.allclose(out_bf16, ref, atol=5e-2, rtol=5e-2)

    print("KERNEL_OK")
</pallas_src>

<mosaic_0001>
module attributes {stable_mosaic.version = 11 : i64} {
  func.func @kernel(%arg0: i32, %arg1: memref<1x16x64xf32, #tpu.memory_space<vmem>>, %arg2: memref<3x72x128xf32, #tpu.memory_space<vmem>>, %arg3: memref<1x128xf32, #tpu.memory_space<vmem>>, %arg4: memref<3x144x128xf32, #tpu.memory_space<vmem>>, %arg5: memref<1x128xf32, #tpu.memory_space<vmem>>, %arg6: memref<3x144x64xf32, #tpu.memory_space<vmem>>, %arg7: memref<1x64xf32, #tpu.memory_space<vmem>>, %arg8: memref<1x1xf32, #tpu.memory_space<smem>>, %arg9: memref<1x16x64xf32, #tpu.memory_space<vmem>>, %arg10: memref<18x72xf32, #tpu.memory_space<vmem>>, %arg11: memref<18x144xf32, #tpu.memory_space<vmem>>, %arg12: memref<18x144xf32, #tpu.memory_space<vmem>>) attributes {dimension_semantics = [#tpu.dimension_semantics<parallel>], iteration_bounds = array<i64: 2>, scalar_prefetch = 0 : i64, scratch_operands = 3 : i64, tpu.core_type = #tpu.core_type<tc>, window_params = [{transform_indices = @transform_0, window_bounds = array<i64: 1, 16, 64>}, {pipeline_mode = #tpu.pipeline_mode<synchronous>, transform_indices = @transform_1, window_bounds = array<i64: 3, 72, 128>}, {pipeline_mode = #tpu.pipeline_mode<synchronous>, transform_indices = @transform_2, window_bounds = array<i64: 1, 128>}, {pipeline_mode = #tpu.pipeline_mode<synchronous>, transform_indices = @transform_3, window_bounds = array<i64: 3, 144, 128>}, {pipeline_mode = #tpu.pipeline_mode<synchronous>, transform_indices = @transform_4, window_bounds = array<i64: 1, 128>}, {pipeline_mode = #tpu.pipeline_mode<synchronous>, transform_indices = @transform_5, window_bounds = array<i64: 3, 144, 64>}, {pipeline_mode = #tpu.pipeline_mode<synchronous>, transform_indices = @transform_6, window_bounds = array<i64: 1, 64>}, {transform_indices = @transform_7, window_bounds = array<i64: 1, 1>}, {transform_indices = @transform_8, window_bounds = array<i64: 1, 16, 64>}]} {
    %c0 = arith.constant 0 : index
    %c0_0 = arith.constant 0 : index
    %0 = memref.load %arg8[%c0, %c0_0] : memref<1x1xf32, #tpu.memory_space<smem>>
    %cst = arith.constant 0.000000e+00 : f32
    %1 = vector.broadcast %cst : f32 to vector<18x72xf32>
    %c0_1 = arith.constant 0 : index
    %c0_2 = arith.constant 0 : index
    %2 = vector.load %arg10[%c0_1, %c0_2] : memref<18x72xf32, #tpu.memory_space<vmem>>, vector<18x72xf32>
    tpu.vector_store %arg10[%c0_1, %c0_2], %1 {strides = array<i32>} : memref<18x72xf32, #tpu.memory_space<vmem>>, vector<18x72xf32>,
    %cst_3 = arith.constant 0.000000e+00 : f32
    %3 = vector.broadcast %cst_3 : f32 to vector<18x144xf32>
    %c0_4 = arith.constant 0 : index
    %c0_5 = arith.constant 0 : index
    %4 = vector.load %arg11[%c0_4, %c0_5] : memref<18x144xf32, #tpu.memory_space<vmem>>, vector<18x144xf32>
    tpu.vector_store %arg11[%c0_4, %c0_5], %3 {strides = array<i32>} : memref<18x144xf32, #tpu.memory_space<vmem>>, vector<18x144xf32>,
    %cst_6 = arith.constant 0.000000e+00 : f32
    %5 = vector.broadcast %cst_6 : f32 to vector<18x144xf32>
    %c0_7 = arith.constant 0 : index
    %c0_8 = arith.constant 0 : index
    %6 = vector.load %arg12[%c0_7, %c0_8] : memref<18x144xf32, #tpu.memory_space<vmem>>, vector<18x144xf32>
    tpu.vector_store %arg12[%c0_7, %c0_8], %5 {strides = array<i32>} : memref<18x144xf32, #tpu.memory_space<vmem>>, vector<18x144xf32>,
    %c0_9 = arith.constant 0 : index
    %c0_10 = arith.constant 0 : index
    %c0_11 = arith.constant 0 : index
    %7 = vector.load %arg1[%c0_9, %c0_10, %c0_11] : memref<1x16x64xf32, #tpu.memory_space<vmem>>, vector<1x16x64xf32>
    %8 = vector.shape_cast %7 : vector<1x16x64xf32> to vector<16x64xf32>
    %c1 = arith.constant 1 : index
    %c4 = arith.constant 4 : index
    %9 = vector.load %arg10[%c1, %c4] : memref<18x72xf32, #tpu.memory_space<vmem>>, vector<16x64xf32>
    tpu.vector_store %arg10[%c1, %c4], %8 {strides = array<i32>} : memref<18x72xf32, #tpu.memory_space<vmem>>, vector<16x64xf32>,
    %c0_12 = arith.constant 0 : index
    %c0_13 = arith.constant 0 : index
    %10 = vector.load %arg3[%c0_12, %c0_13] : memref<1x128xf32, #tpu.memory_space<vmem>>, vector<1x128xf32>
    %c0_14 = arith.constant 0 : index
    %c0_15 = arith.constant 0 : index
    %11 = vector.load %arg10[%c0_14, %c0_15] : memref<18x72xf32, #tpu.memory_space<vmem>>, vector<16x72xf32>
    %c0_16 = arith.constant 0 : index
    %c0_17 = arith.constant 0 : index
    %c0_18 = arith.constant 0 : index
    %12 = vector.load %arg2[%c0_16, %c0_17, %c0_18] : memref<3x72x128xf32, #tpu.memory_space<vmem>>, vector<1x72x128xf32>
    %13 = vector.shape_cast %12 : vector<1x72x128xf32> to vector<72x128xf32>
    %cst_19 = arith.constant dense<0.000000e+00> : vector<16x128xf32>
    %14 = tpu.matmul %11, %13, %cst_19 {dimension_numbers = #tpu.dot_dimension_numbers<[1], [0], [0], [1], [0, 0, 1, 1], [], []>} : vector<16x72xf32>, vector<72x128xf32>, vector<16x128xf32> -> vector<16x128xf32>
    %15 = vector.broadcast %10 : vector<1x128xf32> to vector<16x128xf32>
    %16 = arith.addf %15, %14 : vector<16x128xf32>
    %c1_20 = arith.constant 1 : index
    %c0_21 = arith.constant 0 : index
    %17 = vector.load %arg10[%c1_20, %c0_21] : memref<18x72xf32, #tpu.memory_space<vmem>>, vector<16x72xf32>
    %c1_22 = arith.constant 1 : index
    %c0_23 = arith.constant 0 : index
    %c0_24 = arith.constant 0 : index
    %18 = vector.load %arg2[%c1_22, %c0_23, %c0_24] : memref<3x72x128xf32, #tpu.memory_space<vmem>>, vector<1x72x128xf32>
    %19 = vector.shape_cast %18 : vector<1x72x128xf32> to vector<72x128xf32>
    %cst_25 = arith.constant dense<0.000000e+00> : vector<16x128xf32>
    %20 = tpu.matmul %17, %19, %cst_25 {dimension_numbers = #tpu.dot_dimension_numbers<[1], [0], [0], [1], [0, 0, 1, 1], [], []>} : vector<16x72xf32>, vector<72x128xf32>, vector<16x128xf32> -> vector<16x128xf32>
    %21 = arith.addf %16, %20 : vector<16x128xf32>
    %c2 = arith.constant 2 : index
    %c0_26 = arith.constant 0 : index
    %22 = vector.load %arg10[%c2, %c0_26] : memref<18x72xf32, #tpu.memory_space<vmem>>, vector<16x72xf32>
    %c2_27 = arith.constant 2 : index
    %c0_28 = arith.constant 0 : index
    %c0_29 = arith.constant 0 : index
    %23 = vector.load %arg2[%c2_27, %c0_28, %c0_29] : memref<3x72x128xf32, #tpu.memory_space<vmem>>, vector<1x72x128xf32>
    %24 = vector.shape_cast %23 : vector<1x72x128xf32> to vector<72x128xf32>
    %cst_30 = arith.constant dense<0.000000e+00> : vector<16x128xf32>
    %25 = tpu.matmul %22, %24, %cst_30 {dimension_numbers = #tpu.dot_dimension_numbers<[1], [0], [0], [1], [0, 0, 1, 1], [], []>} : vector<16x72xf32>, vector<72x128xf32>, vector<16x128xf32> -> vector<16x128xf32>
    %26 = arith.addf %21, %25 : vector<16x128xf32>
    %cst_31 = arith.constant 0.000000e+00 : f32
    %27 = vector.broadcast %cst_31 : f32 to vector<16x128xf32>
    %28 = arith.cmpf oge, %26, %27 : vector<16x128xf32>
    %29 = vector.broadcast %0 : f32 to vector<16x128xf32>
    %30 = arith.mulf %29, %26 : vector<16x128xf32>
    %31 = arith.select %28, %26, %30 : vector<16x128xi1>, vector<16x128xf32>
    %c1_32 = arith.constant 1 : index
    %c8 = arith.constant 8 : index
    %32 = vector.load %arg11[%c1_32, %c8] : memref<18x144xf32, #tpu.memory_space<vmem>>, vector<16x128xf32>
    tpu.vector_store %arg11[%c1_32, %c8], %31 {strides = array<i32>} : memref<18x144xf32, #tpu.memory_space<vmem>>, vector<16x128xf32>,
    %c0_33 = arith.constant 0 : index
    %c0_34 = arith.constant 0 : index
    %33 = vector.load %arg5[%c0_33, %c0_34] : memref<1x128xf32, #tpu.memory_space<vmem>>, vector<1x128xf32>
    %c0_35 = arith.constant 0 : index
    %c0_36 = arith.constant 0 : index
    %34 = vector.load %arg11[%c0_35, %c0_36] : memref<18x144xf32, #tpu.memory_space<vmem>>, vector<16x144xf32>
    %c0_37 = arith.constant 0 : index
    %c0_38 = arith.constant 0 : index
    %c0_39 = arith.constant 0 : index
    %35 = vector.load %arg4[%c0_37, %c0_38, %c0_39] : memref<3x144x128xf32, #tpu.memory_space<vmem>>, vector<1x144x128xf32>
    %36 = vector.shape_cast %35 : vector<1x144x128xf32> to vector<144x128xf32>
    %cst_40 = arith.constant dense<0.000000e+00> : vector<16x128xf32>
    %37 = tpu.matmul %34, %36, %cst_40 {dimension_numbers = #tpu.dot_dimension_numbers<[1], [0], [0], [1], [0, 0, 1, 1], [], []>} : vector<16x144xf32>, vector<144x128xf32>, vector<16x128xf32> -> vector<16x128xf32>
    %38 = vector.broadcast %33 : vector<1x128xf32> to vector<16x128xf32>
    %39 = arith.addf %38, %37 : vector<16x128xf32>
    %c1_41 = arith.constant 1 : index
    %c0_42 = arith.constant 0 : index
    %40 = vector.load %arg11[%c1_41, %c0_42] : memref<18x144xf32, #tpu.memory_space<vmem>>, vector<16x144xf32>
    %c1_43 = arith.constant 1 : index
    %c0_44 = arith.constant 0 : index
    %c0_45 = arith.constant 0 : index
    %41 = vector.load %arg4[%c1_43, %c0_44, %c0_45] : memref<3x144x128xf32, #tpu.memory_space<vmem>>, vector<1x144x128xf32>
    %42 = vector.shape_cast %41 : vector<1x144x128xf32> to vector<144x128xf32>
    %cst_46 = arith.constant dense<0.000000e+00> : vector<16x128xf32>
    %43 = tpu.matmul %40, %42, %cst_46 {dimension_numbers = #tpu.dot_dimension_numbers<[1], [0], [0], [1], [0, 0, 1, 1], [], []>} : vector<16x144xf32>, vector<144x128xf32>, vector<16x128xf32> -> vector<16x128xf32>
    %44 = arith.addf %39, %43 : vector<16x128xf32>
    %c2_47 = arith.constant 2 : index
    %c0_48 = arith.constant 0 : index
    %45 = vector.load %arg11[%c2_47, %c0_48] : memref<18x144xf32, #tpu.memory_space<vmem>>, vector<16x144xf32>
    %c2_49 = arith.constant 2 : index
    %c0_50 = arith.constant 0 : index
    %c0_51 = arith.constant 0 : index
    %46 = vector.load %arg4[%c2_49, %c0_50, %c0_51] : memref<3x144x128xf32, #tpu.memory_space<vmem>>, vector<1x144x128xf32>
    %47 = vector.shape_cast %46 : vector<1x144x128xf32> to vector<144x128xf32>
    %cst_52 = arith.constant dense<0.000000e+00> : vector<16x128xf32>
    %48 = tpu.matmul %45, %47, %cst_52 {dimension_numbers = #tpu.dot_dimension_numbers<[1], [0], [0], [1], [0, 0, 1, 1], [], []>} : vector<16x144xf32>, vector<144x128xf32>, vector<16x128xf32> -> vector<16x128xf32>
    %49 = arith.addf %44, %48 : vector<16x128xf32>
    %cst_53 = arith.constant 0.000000e+00 : f32
    %50 = vector.broadcast %cst_53 : f32 to vector<16x128xf32>
    %51 = arith.cmpf oge, %49, %50 : vector<16x128xf32>
    %52 = vector.broadcast %0 : f32 to vector<16x128xf32>
    %53 = arith.mulf %52, %49 : vector<16x128xf32>
    %54 = arith.select %51, %49, %53 : vector<16x128xi1>, vector<16x128xf32>
    %c1_54 = arith.constant 1 : index
    %c8_55 = arith.constant 8 : index
    %55 = vector.load %arg12[%c1_54, %c8_55] : memref<18x144xf32, #tpu.memory_space<vmem>>, vector<16x128xf32>
    tpu.vector_store %arg12[%c1_54, %c8_55], %54 {strides = array<i32>} : memref<18x144xf32, #tpu.memory_space<vmem>>, vector<16x128xf32>,
    %c0_56 = arith.constant 0 : index
    %c0_57 = arith.constant 0 : index
    %56 = vector.load %arg7[%c0_56, %c0_57] : memref<1x64xf32, #tpu.memory_space<vmem>>, vector<1x64xf32>
    %c0_58 = arith.constant 0 : index
    %c0_59 = arith.constant 0 : index
    %57 = vector.load %arg12[%c0_58, %c0_59] : memref<18x144xf32, #tpu.memory_space<vmem>>, vector<16x144xf32>
    %c0_60 = arith.constant 0 : index
    %c0_61 = arith.constant 0 : index
    %c0_62 = arith.constant 0 : index
    %58 = vector.load %arg6[%c0_60, %c0_61, %c0_62] : memref<3x144x64xf32, #tpu.memory_space<vmem>>, vector<1x144x64xf32>
    %59 = vector.shape_cast %58 : vector<1x144x64xf32> to vector<144x64xf32>
    %cst_63 = arith.constant dense<0.000000e+00> : vector<16x64xf32>
    %60 = tpu.matmul %57, %59, %cst_63 {dimension_numbers = #tpu.dot_dimension_numbers<[1], [0], [0], [1], [0, 0, 1, 1], [], []>} : vector<16x144xf32>, vector<144x64xf32>, vector<16x64xf32> -> vector<16x64xf32>
    %61 = vector.broadcast %56 : vector<1x64xf32> to vector<16x64xf32>
    %62 = arith.addf %61, %60 : vector<16x64xf32>
    %c1_64 = arith.constant 1 : index
    %c0_65 = arith.constant 0 : index
    %63 = vector.load %arg12[%c1_64, %c0_65] : memref<18x144xf32, #tpu.memory_space<vmem>>, vector<16x144xf32>
    %c1_66 = arith.constant 1 : index
    %c0_67 = arith.constant 0 : index
    %c0_68 = arith.constant 0 : index
    %64 = vector.load %arg6[%c1_66, %c0_67, %c0_68] : memref<3x144x64xf32, #tpu.memory_space<vmem>>, vector<1x144x64xf32>
    %65 = vector.shape_cast %64 : vector<1x144x64xf32> to vector<144x64xf32>
    %cst_69 = arith.constant dense<0.000000e+00> : vector<16x64xf32>
    %66 = tpu.matmul %63, %65, %cst_69 {dimension_numbers = #tpu.dot_dimension_numbers<[1], [0], [0], [1], [0, 0, 1, 1], [], []>} : vector<16x144xf32>, vector<144x64xf32>, vector<16x64xf32> -> vector<16x64xf32>
    %67 = arith.addf %62, %66 : vector<16x64xf32>
    %c2_70 = arith.constant 2 : index
    %c0_71 = arith.constant 0 : index
    %68 = vector.load %arg12[%c2_70, %c0_71] : memref<18x144xf32, #tpu.memory_space<vmem>>, vector<16x144xf32>
    %c2_72 = arith.constant 2 : index
    %c0_73 = arith.constant 0 : index
    %c0_74 = arith.constant 0 : index
    %69 = vector.load %arg6[%c2_72, %c0_73, %c0_74] : memref<3x144x64xf32, #tpu.memory_space<vmem>>, vector<1x144x64xf32>
    %70 = vector.shape_cast %69 : vector<1x144x64xf32> to vector<144x64xf32>
    %cst_75 = arith.constant dense<0.000000e+00> : vector<16x64xf32>
    %71 = tpu.matmul %68, %70, %cst_75 {dimension_numbers = #tpu.dot_dimension_numbers<[1], [0], [0], [1], [0, 0, 1, 1], [], []>} : vector<16x144xf32>, vector<144x64xf32>, vector<16x64xf32> -> vector<16x64xf32>
    %72 = arith.addf %67, %71 : vector<16x64xf32>
    %c0_76 = arith.constant 0 : index
    %c0_77 = arith.constant 0 : index
    %c0_78 = arith.constant 0 : index
    %73 = vector.load %arg9[%c0_76, %c0_77, %c0_78] : memref<1x16x64xf32, #tpu.memory_space<vmem>>, vector<1x16x64xf32>
    %74 = vector.shape_cast %73 : vector<1x16x64xf32> to vector<16x64xf32>
    %75 = vector.shape_cast %72 : vector<16x64xf32> to vector<1x16x64xf32>
    tpu.vector_store %arg9[%c0_76, %c0_77, %c0_78], %75 {strides = array<i32>} : memref<1x16x64xf32, #tpu.memory_space<vmem>>, vector<1x16x64xf32>,
    return
  }
  func.func @transform_0(%arg0: i32) -> (i32, i32, i32) {
    %c0_i32 = arith.constant 0 : i32
    %c0_i32_0 = arith.constant 0 : i32
    %c0_i32_1 = arith.constant 0 : i32
    return %arg0, %c0_i32, %c0_i32_0 : i32, i32, i32
  }
  func.func @transform_1(%arg0: i32) -> (i32, i32, i32) {
    %c0_i32 = arith.constant 0 : i32
    %c0_i32_0 = arith.constant 0 : i32
    %c0_i32_1 = arith.constant 0 : i32
    %c0_i32_2 = arith.constant 0 : i32
    return %c0_i32, %c0_i32_0, %c0_i32_1 : i32, i32, i32
  }
  func.func @transform_2(%arg0: i32) -> (i32, i32) {
    %c0_i32 = arith.constant 0 : i32
    %c0_i32_0 = arith.constant 0 : i32
    %c0_i32_1 = arith.constant 0 : i32
    return %c0_i32, %c0_i32_0 : i32, i32
  }
  func.func @transform_3(%arg0: i32) -> (i32, i32, i32) {
    %c0_i32 = arith.constant 0 : i32
    %c0_i32_0 = arith.constant 0 : i32
    %c0_i32_1 = arith.constant 0 : i32
    %c0_i32_2 = arith.constant 0 : i32
    return %c0_i32, %c0_i32_0, %c0_i32_1 : i32, i32, i32
  }
  func.func @transform_4(%arg0: i32) -> (i32, i32) {
    %c0_i32 = arith.constant 0 : i32
    %c0_i32_0 = arith.constant 0 : i32
    %c0_i32_1 = arith.constant 0 : i32
    return %c0_i32, %c0_i32_0 : i32, i32
  }
  func.func @transform_5(%arg0: i32) -> (i32, i32, i32) {
    %c0_i32 = arith.constant 0 : i32
    %c0_i32_0 = arith.constant 0 : i32
    %c0_i32_1 = arith.constant 0 : i32
    %c0_i32_2 = arith.constant 0 : i32
    return %c0_i32, %c0_i32_0, %c0_i32_1 : i32, i32, i32
  }
  func.func @transform_6(%arg0: i32) -> (i32, i32) {
    %c0_i32 = arith.constant 0 : i32
    %c0_i32_0 = arith.constant 0 : i32
    %c0_i32_1 = arith.constant 0 : i32
    return %c0_i32, %c0_i32_0 : i32, i32
  }
  func.func @transform_7(%arg0: i32) -> (i32, i32) {
    %c0_i32 = arith.constant 0 : i32
    %c0_i32_0 = arith.constant 0 : i32
    %c0_i32_1 = arith.constant 0 : i32
    return %c0_i32, %c0_i32_0 : i32, i32
  }
  func.func @transform_8(%arg0: i32) -> (i32, i32, i32) {
    %c0_i32 = arith.constant 0 : i32
    %c0_i32_0 = arith.constant 0 : i32
    %c0_i32_1 = arith.constant 0 : i32
    return %arg0, %c0_i32, %c0_i32_0 : i32, i32, i32
  }
}

</mosaic_0001>

<bundles_post_ra>
// kernel: tile.18
= control target key start
LH: loop header
LB: loop body
LE: loop exit
PB: predicated region body
PF: predicated region fallthrough
CT: control target
= control target key end

     0   :  { %s28_s0 = inlined_call_operand.vmem [shape: f32[8], index: 0, kind: input, shape index: {}]   ;;  %s29_s1 = inlined_call_operand.vmem [shape: f32[16,8], index: 1, kind: output, shape index: {}]  }
   0x1   :  { %v4_v0 = vld [vmem:[%s28_s0] ss:$0 sm:$0xff] }
   0x2   :  { %5 = vst [vmem:[%s29_s1] sm:$0xff] %v4_v0  ;;  %8 = vst [vmem:[%s29_s1 + $0x8] sm:$0xff] %v4_v0 }

// kernel: tile.19
= control target key start
LH: loop header
LB: loop body
LE: loop exit
PB: predicated region body
PF: predicated region fallthrough
CT: control target
= control target key end

     0   :  { %s131_s10 = smov 120   ;;  %s132_s11 = smov 104   ;;  %vm3_vm0 = vcmask 64512   ;;  %vm9_vm1 = vcmask 1048512   ;;  %vm15_vm2 = vcmask 982912   ;;  %vm21_vm3 = vcmask 917312   ;;  %s207_s0 = inlined_call_operand.vmem [shape: f32[16,8], index: 0, kind: input, shape index: {}]   ;;  %s208_s1 = inlined_call_operand.vmem [shape: f32[1,128], index: 1, kind: output, shape index: {}]  }
   0x1   :  { %v101_v0 = vld [vmem:[%s207_s0 + $0xf] sm:$0x1]   ;;  %v103_v1 = vld [vmem:[%s207_s0 + $0xd] sm:$0x1]   ;;  %v102_v2 = vld [vmem:[%s207_s0 + $0xe] sm:$0x1]  }
   0x2   :  { %7 = vrot.lane.b32.xlu0 %v101_v0, %s131_s10  ;;  %19 = vrot.lane.b32.xlu1 %v103_v1, %s132_s11  ;;  %v104_v3 = vld [vmem:[%s207_s0 + $0xc] sm:$0x1]   ;;  %s133_s16 = smov 112   ;;  %s134_s17 = smov 96   ;;  %v105_v4 = vld [vmem:[%s207_s0 + $0xb] sm:$0x1]  }
   0x3   :  { %v106_v5 = vld [vmem:[%s207_s0 + $0xa] sm:$0x1]   ;;  %v2_v6 = vld [vmem:[%s207_s0] sm:$0x1]   ;;  %s135_s24 = smov 88   ;;  %s136_s25 = smov 80  }
   0x4   :  { %4 = vst.msk [vmem:[#allocation0] sm:$0x1] %vm3_vm0, %v2_v6   ;;  %v107_v7 = vld [vmem:[%s207_s0 + $0x9] sm:$0x1]   ;;  %v108_v8 = vld [vmem:[%s207_s0 + $0x8] sm:$0x1]  }
   0x5   :  { %s137_s30 = smov 72   ;;  %s138_s2 = smov 64   ;;  %v109_v9 = vld [vmem:[%s207_s0 + $0x7] sm:$0x1]   ;;  %v110_v10 = vld [vmem:[%s207_s0 + $0x6] sm:$0x1]  }
   0x6   :  { %13 = vrot.lane.b32.xlu0 %v102_v2, %s133_s16  ;;  %25 = vrot.lane.b32.xlu1 %v104_v3, %s134_s17  ;;  %s139_s7 = smov 56   ;;  %s140_s8 = smov 48   ;;  %v111_v11 = vld [vmem:[%s207_s0 + $0x5] sm:$0x1]   ;;  %v112_v12 = vld [vmem:[%s207_s0 + $0x4] sm:$0x1]  }
   0x7   :  { %s141_s13 = smov 40   ;;  %s142_s14 = smov 32   ;;  %v113_v13 = vld [vmem:[%s207_s0 + $0x3] sm:$0x1]   ;;  %v114_v14 = vld [vmem:[%s207_s0 + $0x2] sm:$0x1]  }
   0x8   :  { %s143_s19 = smov 24   ;;  %s144_s20 = smov 16   ;;  %v115_v15 = vld [vmem:[%s207_s0 + $0x1] sm:$0x1]   ;;  %vm27_vm4 = vcmask 851712   ;;  %vm33_vm5 = vcmask 786112  }
   0x9   :  { %s145_s0 = smov 8   ;;  %vm39_vm6 = vcmask 720512   ;;  %vm45_vm7 = vcmask 654912   ;;  %vm51_vm8 = vcmask 589312   ;;  %vm57_vm9 = vcmask 523712  }
   0xa   :  { %31 = vrot.lane.b32.xlu0 %v105_v4, %s135_s24  ;;  %37 = vrot.lane.b32.xlu1 %v106_v5, %s136_s25  ;;  %vm63_vm10 = vcmask 458112   ;;  %vm69_vm11 = vcmask 392512   ;;  %vm75_vm12 = vcmask 326912   ;;  %vm81_vm13 = vcmask 261312  }
   0xb   :  { %vm87_vm14 = vcmask 195712   ;;  %vm93_vm15 = vcmask 130112  }
   0xe   :  { %43 = vrot.lane.b32.xlu0 %v107_v7, %s137_s30  ;;  %49 = vrot.lane.b32.xlu1 %v108_v8, %s138_s2 }
  0x12   :  { %55 = vrot.lane.b32.xlu0 %v109_v9, %s139_s7  ;;  %61 = vrot.lane.b32.xlu1 %v110_v10, %s140_s8 }
  0x16   :  { %67 = vrot.lane.b32.xlu0 %v111_v11, %s141_s13  ;;  %73 = vrot.lane.b32.xlu1 %v112_v12, %s142_s14 }
  0x1a   :  { %79 = vrot.lane.b32.xlu0 %v113_v13, %s143_s19  ;;  %85 = vrot.lane.b32.xlu1 %v114_v14, %s144_s20 }
  0x1e   :  { %91 = vrot.lane.b32.xlu0 %v115_v15, %s145_s0 }
  0x74   :  { %v8_v16 = vpop.permute.xlu0 %7   ;;  %v20_v17 = vpop.permute.xlu1 %19  }
  0x75   :  { %10 = vst.msk [vmem:[#allocation0] sm:$0x1] %vm9_vm1, %v8_v16  }
  0x78   :  { %v14_v18 = vpop.permute.xlu0 %13   ;;  %v26_v19 = vpop.permute.xlu1 %25  }
  0x79   :  { %16 = vst.msk [vmem:[#allocation0] sm:$0x1] %vm15_vm2, %v14_v18  }
  0x7a   :  { %22 = vst.msk [vmem:[#allocation0] sm:$0x1] %vm21_vm3, %v20_v17  }
  0x7b   :  { %28 = vst.msk [vmem:[#allocation0] sm:$0x1] %vm27_vm4, %v26_v19  }
  0x7c   :  { %v32_v20 = vpop.permute.xlu0 %31   ;;  %v38_v21 = vpop.permute.xlu1 %37  }
  0x7d   :  { %34 = vst.msk [vmem:[#allocation0] sm:$0x1] %vm33_vm5, %v32_v20  }
  0x7e   :  { %40 = vst.msk [vmem:[#allocation0] sm:$0x1] %vm39_vm6, %v38_v21  }
  0x80   :  { %v44_v22 = vpop.permute.xlu0 %43   ;;  %v50_v23 = vpop.permute.xlu1 %49  }
  0x81   :  { %46 = vst.msk [vmem:[#allocation0] sm:$0x1] %vm45_vm7, %v44_v22  }
  0x82   :  { %52 = vst.msk [vmem:[#allocation0] sm:$0x1] %vm51_vm8, %v50_v23  }
  0x84   :  { %v56_v24 = vpop.permute.xlu0 %55   ;;  %v62_v25 = vpop.permute.xlu1 %61  }
  0x85   :  { %58 = vst.msk [vmem:[#allocation0] sm:$0x1] %vm57_vm9, %v56_v24  }
  0x86   :  { %64 = vst.msk [vmem:[#allocation0] sm:$0x1] %vm63_vm10, %v62_v25  }
  0x88   :  { %v68_v26 = vpop.permute.xlu0 %67   ;;  %v74_v27 = vpop.permute.xlu1 %73  }
  0x89   :  { %70 = vst.msk [vmem:[#allocation0] sm:$0x1] %vm69_vm11, %v68_v26  }
  0x8a   :  { %76 = vst.msk [vmem:[#allocation0] sm:$0x1] %vm75_vm12, %v74_v27  }
  0x8c   :  { %v80_v28 = vpop.permute.xlu0 %79   ;;  %v86_v29 = vpop.permute.xlu1 %85  }
  0x8d   :  { %82 = vst.msk [vmem:[#allocation0] sm:$0x1] %vm81_vm13, %v80_v28  }
  0x8e   :  { %88 = vst.msk [vmem:[#allocation0] sm:$0x1] %vm87_vm14, %v86_v29  }
  0x90   :  { %v92_v30 = vpop.permute.xlu0 %91  }
  0x91   :  { %94 = vst.msk [vmem:[#allocation0] sm:$0x1] %vm93_vm15, %v92_v30  }
  0x98   :  { %v98_v31 = vld [vmem:[#allocation0] sm:$0x1] }
  0x99   :  { %100 = vst [vmem:[%s208_s1] sm:$0x1] %v98_v31 }

// kernel: tile.28
= control target key start
LH: loop header
LB: loop body
LE: loop exit
PB: predicated region body
PF: predicated region fallthrough
CT: control target
= control target key end

     0   :  { %s28_s0 = inlined_call_operand.vmem [shape: f32[4], index: 0, kind: input, shape index: {}]   ;;  %s29_s1 = inlined_call_operand.vmem [shape: f32[16,4], index: 1, kind: output, shape index: {}]  }
   0x1   :  { %v4_v0 = vld [vmem:[%s28_s0] ss:$0 sm:$0xff] }
   0x2   :  { %5 = vst [vmem:[%s29_s1] sm:$0xff] %v4_v0  ;;  %8 = vst [vmem:[%s29_s1 + $0x8] sm:$0xff] %v4_v0 }

// kernel: tile.29
= control target key start
LH: loop header
LB: loop body
LE: loop exit
PB: predicated region body
PF: predicated region fallthrough
CT: control target
= control target key end

     0   :  { %s131_s10 = smov 60   ;;  %s132_s11 = smov 52   ;;  %vm3_vm0 = vcmask 31744   ;;  %vm9_vm1 = vcmask 523744   ;;  %vm15_vm2 = vcmask 490944   ;;  %vm21_vm3 = vcmask 458144   ;;  %s207_s0 = inlined_call_operand.vmem [shape: f32[16,4], index: 0, kind: input, shape index: {}]   ;;  %s208_s1 = inlined_call_operand.vmem [shape: f32[1,64], index: 1, kind: output, shape index: {}]  }
   0x1   :  { %v101_v0 = vld [vmem:[%s207_s0 + $0xf] sm:$0x1]   ;;  %v103_v1 = vld [vmem:[%s207_s0 + $0xd] sm:$0x1]   ;;  %v102_v2 = vld [vmem:[%s207_s0 + $0xe] sm:$0x1]  }
   0x2   :  { %7 = vrot.lane.b32.xlu0 %v101_v0, %s131_s10  ;;  %19 = vrot.lane.b32.xlu1 %v103_v1, %s132_s11  ;;  %v104_v3 = vld [vmem:[%s207_s0 + $0xc] sm:$0x1]   ;;  %s133_s16 = smov 56   ;;  %s134_s17 = smov 48   ;;  %v105_v4 = vld [vmem:[%s207_s0 + $0xb] sm:$0x1]  }
   0x3   :  { %v106_v5 = vld [vmem:[%s207_s0 + $0xa] sm:$0x1]   ;;  %v2_v6 = vld [vmem:[%s207_s0] sm:$0x1]   ;;  %s135_s24 = smov 44   ;;  %s136_s25 = smov 40  }
   0x4   :  { %4 = vst.msk [vmem:[#allocation0] sm:$0x1] %vm3_vm0, %v2_v6   ;;  %v107_v7 = vld [vmem:[%s207_s0 + $0x9] sm:$0x1]   ;;  %v108_v8 = vld [vmem:[%s207_s0 + $0x8] sm:$0x1]  }
   0x5   :  { %s137_s30 = smov 36   ;;  %s138_s2 = smov 32   ;;  %v109_v9 = vld [vmem:[%s207_s0 + $0x7] sm:$0x1]   ;;  %v110_v10 = vld [vmem:[%s207_s0 + $0x6] sm:$0x1]  }
   0x6   :  { %13 = vrot.lane.b32.xlu0 %v102_v2, %s133_s16  ;;  %25 = vrot.lane.b32.xlu1 %v104_v3, %s134_s17  ;;  %s139_s7 = smov 28   ;;  %s140_s8 = smov 24   ;;  %v111_v11 = vld [vmem:[%s207_s0 + $0x5] sm:$0x1]   ;;  %v112_v12 = vld [vmem:[%s207_s0 + $0x4] sm:$0x1]  }
   0x7   :  { %s141_s13 = smov 20   ;;  %s142_s14 = smov 16   ;;  %v113_v13 = vld [vmem:[%s207_s0 + $0x3] sm:$0x1]   ;;  %v114_v14 = vld [vmem:[%s207_s0 + $0x2] sm:$0x1]  }
   0x8   :  { %s143_s19 = smov 12   ;;  %s144_s20 = smov 8   ;;  %v115_v15 = vld [vmem:[%s207_s0 + $0x1] sm:$0x1]   ;;  %vm27_vm4 = vcmask 425344   ;;  %vm33_vm5 = vcmask 392544  }
   0x9   :  { %s145_s0 = smov 4   ;;  %vm39_vm6 = vcmask 359744   ;;  %vm45_vm7 = vcmask 326944   ;;  %vm51_vm8 = vcmask 294144   ;;  %vm57_vm9 = vcmask 261344  }
   0xa   :  { %31 = vrot.lane.b32.xlu0 %v105_v4, %s135_s24  ;;  %37 = vrot.lane.b32.xlu1 %v106_v5, %s136_s25  ;;  %vm63_vm10 = vcmask 228544   ;;  %vm69_vm11 = vcmask 195744   ;;  %vm75_vm12 = vcmask 162944   ;;  %vm81_vm13 = vcmask 130144  }
   0xb   :  { %vm87_vm14 = vcmask 97344   ;;  %vm93_vm15 = vcmask 64544  }
   0xe   :  { %43 = vrot.lane.b32.xlu0 %v107_v7, %s137_s30  ;;  %49 = vrot.lane.b32.xlu1 %v108_v8, %s138_s2 }
  0x12   :  { %55 = vrot.lane.b32.xlu0 %v109_v9, %s139_s7  ;;  %61 = vrot.lane.b32.xlu1 %v110_v10, %s140_s8 }
  0x16   :  { %67 = vrot.lane.b32.xlu0 %v111_v11, %s141_s13  ;;  %73 = vrot.lane.b32.xlu1 %v112_v12, %s142_s14 }
  0x1a   :  { %79 = vrot.lane.b32.xlu0 %v113_v13, %s143_s19  ;;  %85 = vrot.lane.b32.xlu1 %v114_v14, %s144_s20 }
  0x1e   :  { %91 = vrot.lane.b32.xlu0 %v115_v15, %s145_s0 }
  0x74   :  { %v8_v16 = vpop.permute.xlu0 %7   ;;  %v20_v17 = vpop.permute.xlu1 %19  }
  0x75   :  { %10 = vst.msk [vmem:[#allocation0] sm:$0x1] %vm9_vm1, %v8_v16  }
  0x78   :  { %v14_v18 = vpop.permute.xlu0 %13   ;;  %v26_v19 = vpop.permute.xlu1 %25  }
  0x79   :  { %16 = vst.msk [vmem:[#allocation0] sm:$0x1] %vm15_vm2, %v14_v18  }
  0x7a   :  { %22 = vst.msk [vmem:[#allocation0] sm:$0x1] %vm21_vm3, %v20_v17  }
  0x7b   :  { %28 = vst.msk [vmem:[#allocation0] sm:$0x1] %vm27_vm4, %v26_v19  }
  0x7c   :  { %v32_v20 = vpop.permute.xlu0 %31   ;;  %v38_v21 = vpop.permute.xlu1 %37  }
  0x7d   :  { %34 = vst.msk [vmem:[#allocation0] sm:$0x1] %vm33_vm5, %v32_v20  }
  0x7e   :  { %40 = vst.msk [vmem:[#allocation0] sm:$0x1] %vm39_vm6, %v38_v21  }
  0x80   :  { %v44_v22 = vpop.permute.xlu0 %43   ;;  %v50_v23 = vpop.permute.xlu1 %49  }
  0x81   :  { %46 = vst.msk [vmem:[#allocation0] sm:$0x1] %vm45_vm7, %v44_v22  }
  0x82   :  { %52 = vst.msk [vmem:[#allocation0] sm:$0x1] %vm51_vm8, %v50_v23  }
  0x84   :  { %v56_v24 = vpop.permute.xlu0 %55   ;;  %v62_v25 = vpop.permute.xlu1 %61  }
  0x85   :  { %58 = vst.msk [vmem:[#allocation0] sm:$0x1] %vm57_vm9, %v56_v24  }
  0x86   :  { %64 = vst.msk [vmem:[#allocation0] sm:$0x1] %vm63_vm10, %v62_v25  }
  0x88   :  { %v68_v26 = vpop.permute.xlu0 %67   ;;  %v74_v27 = vpop.permute.xlu1 %73  }
  0x89   :  { %70 = vst.msk [vmem:[#allocation0] sm:$0x1] %vm69_vm11, %v68_v26  }
  0x8a   :  { %76 = vst.msk [vmem:[#allocation0] sm:$0x1] %vm75_vm12, %v74_v27  }
  0x8c   :  { %v80_v28 = vpop.permute.xlu0 %79   ;;  %v86_v29 = vpop.permute.xlu1 %85  }
  0x8d   :  { %82 = vst.msk [vmem:[#allocation0] sm:$0x1] %vm81_vm13, %v80_v28  }
  0x8e   :  { %88 = vst.msk [vmem:[#allocation0] sm:$0x1] %vm87_vm14, %v86_v29  }
  0x90   :  { %v92_v30 = vpop.permute.xlu0 %91  }
  0x91   :  { %94 = vst.msk [vmem:[#allocation0] sm:$0x1] %vm93_vm15, %v92_v30  }
  0x98   :  { %v98_v31 = vld [vmem:[#allocation0] sm:$0x1] }
  0x99   :  { %100 = vst [vmem:[%s208_s1] sm:$0x1] %v98_v31 }

// kernel: _conv2d_cascade_impl.1
= control target key start
LH: loop header
LB: loop body
LE: loop exit
PB: predicated region body
PF: predicated region fallthrough
CT: control target
= control target key end

     0   :  { %s1991_s29 = smov 0   ;;  %s2585_s0 = inlined_call_operand.vmem [shape: f32[2,16,64], index: 0, kind: input, shape index: {}]   ;;  %s2586_s1 = inlined_call_operand.vmem [shape: f32[3,72,128], index: 1, kind: input, shape index: {}]   ;;  %s2587_s2 = inlined_call_operand.vmem [shape: f32[1,128], index: 2, kind: input, shape index: {}]   ;;  %s2588_s3 = inlined_call_operand.vmem [shape: f32[3,144,128], index: 3, kind: input, shape index: {}]   ;;  %s2589_s4 = inlined_call_operand.vmem [shape: f32[1,128], index: 4, kind: input, shape index: {}]   ;;  %s2590_s5 = inlined_call_operand.vmem [shape: f32[3,144,64], index: 5, kind: input, shape index: {}]   ;;  %s2591_s6 = inlined_call_operand.vmem [shape: f32[1,64], index: 6, kind: input, shape index: {}]   ;;  %s2592_s7 = inlined_call_operand.<no memory space> [shape: f32[1,1], index: 7, kind: input, shape index: {}]   ;;  %s2593_s8 = inlined_call_operand.vmem [shape: f32[2,16,64], index: 8, kind: output, shape index: {}]  }
   0x1   :  { %13 = sst [smem:[#allocation5]] %s2592_s7 }
   0x2 LB: > { %s1463_s30 = sadd.s32 4294967295, %s1937_s29   ;;  %p1467_p0 = scmp.ge.s32.totalorder %s1937_s29, 1  ;;  %s1937_s29 = sphi %s1991_s29, %s19_s29  }
   0x3   : > { %p263_p1 = scmp.lt.s32.totalorder %s1937_s29, 3 }
   0x5   : > { %p264_p2 = pnand %p1467_p0, %p263_p1 }
   0x6   : > { %p297_p3 = scmp.lt.s32.totalorder (!%p264_p2), %s1463_s30, 1  ;;  %v1475_v0 = vld [vmem:[%s2586_s1 + $0x48] sm:$0xff] (!%p264_p2)  ;;  %v1476_v1 = vld [vmem:[%s2586_s1 + $0x50] sm:$0xff] (!%p264_p2)  ;;  %v343_v2 = vld [vmem:[%s2586_s1] sm:$0xff] (!%p264_p2)  ;;  %vm308_vm0 = vcmask (!%p264_p2), 588800   ;;  %vm311_vm1 = vcmask (!%p264_p2), 582656  }
   0x7   : > { %267 = sbr.rel (%p264_p2) target bundleno = 1217 (0x4c1), region = 52  ;;  %v1699_v3 = vpack.c.bf16 (!%p264_p2), %v1476_v1, %v1475_v0  ;;  %v344_v4 = vld [vmem:[%s2586_s1 + $0x8] sm:$0xff] (!%p264_p2)  ;;  %v1477_v5 = vld [vmem:[%s2586_s1 + $0x58] sm:$0xff] (!%p264_p2)  ;;  %v1478_v6 = vld [vmem:[%s2586_s1 + $0x60] sm:$0xff] (!%p264_p2)  ;;  %v1939_v11 = vmov (!%p264_p2), 0.0   ;;  %s1940_s19 = smov (!%p264_p2), 4  }
   0x8   : > { %v1683_v7 = vpack.c.bf16 (!%p264_p2), %v344_v4, %v343_v2  ;;  %v1703_v8 = vpack.c.bf16 (!%p264_p2), %v1478_v6, %v1477_v5  ;;  %v345_v9 = vld [vmem:[%s2586_s1 + $0x10] sm:$0xff] (!%p264_p2)  ;;  %v346_v10 = vld [vmem:[%s2586_s1 + $0x18] sm:$0xff] (!%p264_p2)  ;;  %309 = vst.msk [vmem:[#allocation2] sm:$0xff] (!%p264_p2), %vm308_vm0, %v1939_v11  ;;  %310 = vst.msk [vmem:[#allocation2 + $0x8] sm:$0xff] (!%p264_p2), %vm308_vm0, %v1939_v11  ;;  %vm337_vm2 = vcmask (!%p264_p2), 556064   ;;  %vm319_vm3 = vcmask (!%p264_p2), 123904  }
   0x9   : > { %313 = vst [vmem:[#allocation3] sm:$0xff] (!%p264_p2), %v1939_v11  ;;  %316 = vst [vmem:[#allocation3 + $0x10] sm:$0xff] (!%p264_p2), %v1939_v11  ;;  %v1479_v12 = vld [vmem:[%s2586_s1 + $0x68] sm:$0xff] (!%p264_p2)  ;;  %1700 = vmatprep.subr.bf16.mxu0 (!%p264_p2), %v1699_v3  ;;  %v1687_v13 = vpack.c.bf16 (!%p264_p2), %v346_v10, %v345_v9  ;;  %v1480_v14 = vld [vmem:[%s2586_s1 + $0x70] sm:$0xff] (!%p264_p2)  ;;  %v1941_v53 = vmov (!%p264_p2), 0.0|0.0   ;;  %vm314_vm4 = vcmask (!%p264_p2), 130048  }
   0xa   : > { %318 = vst [vmem:[#allocation3 + $0x20] sm:$0x3] (!%p264_p2), %v1939_v11  ;;  %321 = vst [vmem:[#allocation4] sm:$0xff] (!%p264_p2), %v1939_v11  ;;  %v347_v15 = vld [vmem:[%s2586_s1 + $0x20] sm:$0xff] (!%p264_p2)  ;;  %v348_v16 = vld [vmem:[%s2586_s1 + $0x28] sm:$0xff] (!%p264_p2)  ;;  %1684 = vmatprep.subr.bf16.mxu1 (!%p264_p2), %v1683_v7  ;;  %1702 = vmatpush3.bf16.msra.mxu0 (!%p264_p2), %v1699_v3  ;;  %v1707_v17 = vpack.c.bf16 (!%p264_p2), %v1480_v14, %v1479_v12  ;;  %vm640_vm7 = vcmask (!%p264_p2), 1040384  }
   0xb   : > { %323 = vst [vmem:[#allocation4 + $0x10] sm:$0xff] (!%p264_p2), %v1939_v11  ;;  %325 = vst [vmem:[#allocation4 + $0x20] sm:$0x3] (!%p264_p2), %v1939_v11  ;;  %1686 = vmatpush3.bf16.msra.mxu1 (!%p264_p2), %v1683_v7  ;;  %1704 = vmatprep.subr.bf16.mxu0 (!%p264_p2), %v1703_v8  ;;  %v1691_v19 = vpack.c.bf16 (!%p264_p2), %v348_v16, %v347_v15  ;;  %v1481_v20 = vld [vmem:[%s2586_s1 + $0x78] sm:$0xff] (!%p264_p2)  ;;  %v1482_v21 = vld [vmem:[%s2586_s1 + $0x80] sm:$0xff] (!%p264_p2)  ;;  %s1942_s25 = smov (!%p264_p2), 8  }
   0xc   : > { %312 = vst.msk [vmem:[#allocation2 + $0x10] sm:$0x3] (!%p264_p2), %vm311_vm1, %v1939_v11  ;;  %1688 = vmatprep.subr.bf16.mxu1 (!%p264_p2), %v1687_v13  ;;  %v349_v22 = vld [vmem:[%s2586_s1 + $0x30] sm:$0xff] (!%p264_p2)  ;;  %v350_v23 = vld [vmem:[%s2586_s1 + $0x38] sm:$0xff] (!%p264_p2)  ;;  %v1711_v25 = vpack.c.bf16 (!%p264_p2), %v1482_v21, %v1481_v20  ;;  %v1483_v27 = vld [vmem:[%s2586_s1 + $0x88] sm:$0xff] (!%p264_p2)  ;;  %vm661_vm8 = vcmask (!%p264_p2), 1040448  }
   0xd   : > { %v1695_v26 = vpack.c.bf16 (!%p264_p2), %v350_v23, %v349_v22  ;;  %v1486_v28 = vld [vmem:[%s2586_s1 + $0x90] sm:$0xff] (!%p264_p2)  ;;  %v1487_v29 = vld [vmem:[%s2586_s1 + $0x98] sm:$0xff] (!%p264_p2)  ;;  %v351_v30 = vld [vmem:[%s2586_s1 + $0x40] sm:$0xff] (!%p264_p2)  ;;  %320 = vst.msk [vmem:[#allocation3 + $0x28] sm:$0x3] (!%p264_p2), %vm319_vm3, %v1939_v11  ;;  %vm663_vm9 = vcmask (!%p264_p2), 57344  }
   0xe   : > { %s2595_s30 = smov (!%p297_p3, %s1463_s30), 1  ;;  %1706 = vmatpush3.bf16.msra.mxu0 %v1703_v8  ;;  %v1715_v31 = vpack.c.bf16 %v1487_v29, %v1486_v28  ;;  %v1488_v34 = vld [vmem:[%s2586_s1 + $0xa0] sm:$0xff]  ;;  %v1489_v37 = vld [vmem:[%s2586_s1 + $0xa8] sm:$0xff]  ;;  %v1490_v39 = vld [vmem:[%s2586_s1 + $0xb0] sm:$0xff]  ;;  %326 = vst.msk [vmem:[#allocation4 + $0x28] sm:$0x3] %vm319_vm3, %v1939_v11 }
   0xf   : > { %s1585_s11 = sshll.u32 %s2595_s30, 4  ;;  %1690 = vmatpush3.bf16.msra.mxu1 %v1687_v13  ;;  %1708 = vmatprep.subr.bf16.mxu0 %v1707_v17  ;;  %v1719_v38 = vpack.c.bf16 %v1489_v37, %v1488_v34  ;;  %v1491_v40 = vld [vmem:[%s2586_s1 + $0xb8] sm:$0xff]  ;;  %v1492_v45 = vld [vmem:[%s2586_s1 + $0xc0] sm:$0xff]  ;;  %v1493_v46 = vld [vmem:[%s2586_s1 + $0xc8] sm:$0xff]  ;;  %315 = vst.msk [vmem:[#allocation3 + $0x8] sm:$0xff] %vm314_vm4, %v1939_v11  ;;  %vm653_vm10 = vcmask 1047617  }
  0x10   : > { %s301_s14 = scalar_lea.vmem %s2585_s0, %s1585_s11  ;;  %1692 = vmatprep.subr.bf16.mxu1 %v1691_v19  ;;  %v1723_v44 = vpack.c.bf16 %v1491_v40, %v1490_v39  ;;  %v1727_v47 = vpack.c.bf16 %v1493_v46, %v1492_v45  ;;  %v1494_v48 = vld [vmem:[%s2586_s1 + $0xd0] sm:$0xff]  ;;  %v670_v50 = vld [vmem:[%s2588_s3] sm:$0xff]  ;;  %v671_v51 = vld [vmem:[%s2588_s3 + $0x8] sm:$0xff]  ;;  %317 = vst.msk [vmem:[#allocation3 + $0x18] sm:$0xff] %vm314_vm4, %v1939_v11  ;;  %vm655_vm11 = vcmask 64513   ;;  %vm657_vm12 = vcmask 1047616   ;;  %s306_s17 = scalar_lea.vmem %s2593_s8, %s1585_s11 }
  0x11   : > { %v327_v18 = vld [vmem:[%s301_s14] sm:$0xff]  ;;  %v328_v24 = vld [vmem:[%s301_s14 + $0x8] sm:$0xff]  ;;  %v672_v52 = vld [vmem:[%s2588_s3 + $0x10] sm:$0xff]  ;;  %v1732_v54 = vpack.c.bf16 %v671_v51, %v670_v50  ;;  %s307_s14 = sld [smem:[#allocation5]]  ;;  %322 = vst.msk [vmem:[#allocation4 + $0x8] sm:$0xff] %vm314_vm4, %v1939_v11  ;;  %vm659_vm13 = vcmask 64512  }
  0x12   : > { %331 = vrot.lane.b32.xlu0 %v327_v18, %s1940_s19  ;;  %1710 = vmatpush3.bf16.msra.mxu0 %v1707_v17  ;;  %v673_v55 = vld [vmem:[%s2588_s3 + $0x18] sm:$0xff]  ;;  %v674_v57 = vld [vmem:[%s2588_s3 + $0x20] sm:$0xff]  ;;  %v675_v58 = vld [vmem:[%s2588_s3 + $0x28] sm:$0xff]  ;;  %324 = vst.msk [vmem:[#allocation4 + $0x18] sm:$0xff] %vm314_vm4, %v1939_v11  ;;  %vm808_vm14 = vcmask 1046528   ;;  %vm929_vm15 = vcmask 1045504  }
  0x13   : > { %1694 = vmatpush3.bf16.msra.mxu1 %v1691_v19  ;;  %1712 = vmatprep.subr.bf16.mxu0 %v1711_v25  ;;  %v1735_v56 = vpack.c.bf16 %v673_v55, %v672_v52  ;;  %v1738_v59 = vpack.c.bf16 %v675_v58, %v674_v57  ;;  %v676_v60 = vld [vmem:[%s2588_s3 + $0x30] sm:$0xff]  ;;  %v677_v61 = vld [vmem:[%s2588_s3 + $0x38] sm:$0xff]  ;;  %v678_v63 = vld [vmem:[%s2588_s3 + $0x40] sm:$0xff] }
  0x14   : > { %1696 = vmatprep.subr.bf16.mxu1 %v1695_v26  ;;  %v1741_v62 = vpack.c.bf16 %v677_v61, %v676_v60  ;;  %v679_v0 = vld [vmem:[%s2588_s3 + $0x48] sm:$0xff]  ;;  %v680_v2 = vld [vmem:[%s2588_s3 + $0x50] sm:$0xff]  ;;  %v681_v3 = vld [vmem:[%s2588_s3 + $0x58] sm:$0xff] }
  0x15   : > { %v1744_v1 = vpack.c.bf16 %v679_v0, %v678_v63  ;;  %v1747_v4 = vpack.c.bf16 %v681_v3, %v680_v2  ;;  %v682_v5 = vld [vmem:[%s2588_s3 + $0x60] sm:$0xff]  ;;  %v683_v6 = vld [vmem:[%s2588_s3 + $0x68] sm:$0xff]  ;;  %v684_v10 = vld [vmem:[%s2588_s3 + $0x70] sm:$0xff] }
  0x16   : > { %333 = vrot.lane.b32.xlu0 %v328_v24, %s1940_s19  ;;  %1714 = vmatpush3.bf16.msra.mxu0 %v1711_v25  ;;  %v1750_v7 = vpack.c.bf16 %v683_v6, %v682_v5  ;;  %v685_v12 = vld [vmem:[%s2588_s3 + $0x78] sm:$0xff]  ;;  %v1474_v14 = vld [vmem:[%s2587_s2] ss:$0 sm:$0xff]  ;;  %v687_v16 = vld [vmem:[%s2588_s3 + $0x88] sm:$0xff] }
  0x17   : > { %1698 = vmatpush3.bf16.msra.mxu1 %v1695_v26  ;;  %1657 = vmatprep.subr.mxu0 %v1483_v27  ;;  %v1753_v13 = vpack.c.bf16 %v685_v12, %v684_v10  ;;  %v686_v15 = vld [vmem:[%s2588_s3 + $0x80] sm:$0xff]  ;;  %v2183_v20 = vstv %s307_s14  ;;  %v1500_v34 = vld [vmem:[%s2588_s3 + $0x90] sm:$0xff]  ;;  %v1503_v40 = vld [vmem:[%s2588_s3 + $0xa8] sm:$0xff] }
  0x18   : > { %1636 = vmatprep.subr.mxu1 %v351_v30  ;;  %v1756_v18 = vpack.c.bf16 %v687_v16, %v686_v15  ;;  %v1502_v37 = vld [vmem:[%s2588_s3 + $0xa0] sm:$0xff]  ;;  %v1505_v46 = vld [vmem:[%s2588_s3 + $0xb8] sm:$0xff]  ;;  %v1507_v52 = vld [vmem:[%s2588_s3 + $0xc8] sm:$0xff] }
  0x19   : > { %v1506_v51 = vld [vmem:[%s2588_s3 + $0xc0] sm:$0xff]  ;;  %v1508_v55 = vld [vmem:[%s2588_s3 + $0xd0] sm:$0xff] }
  0x1a   : > { %1658 = vmatpush3.msra.mxu0 %v1483_v27  ;;  %v1510_v58 = vld [vmem:[%s2588_s3 + $0xe0] sm:$0xff]  ;;  %v1512_v61 = vld [vmem:[%s2588_s3 + $0xf0] sm:$0xff] }
  0x1b   : > { %1637 = vmatpush3.msra.mxu1 %v351_v30  ;;  %1716 = vmatprep.subr.bf16.mxu0 %v1715_v31  ;;  %v1514_v0 = vld [vmem:[%s2588_s3 + $0x100] sm:$0xff]  ;;  %v1516_v3 = vld [vmem:[%s2588_s3 + $0x110] sm:$0xff] }
  0x1c   : > { %1731 = vmatprep.subr.bf16.mxu1 %v1941_v53  ;;  %v1522_v16 = vld [vmem:[%s2588_s3 + $0x130] sm:$0xff] }
  0x84   : > { %v332_v32 = vpop.permute.xlu0 %331 }
  0x85   : > { %338 = vst.msk [vmem:[#allocation2 + $0x1] sm:$0xff] %vm337_vm2, %v332_v32 }
  0x88   : > { %v334_v33 = vpop.permute.xlu0 %333 }
  0x89   : > { %339 = vst.msk [vmem:[#allocation2 + $0x9] sm:$0xff] %vm337_vm2, %v334_v33  ;;  %vm1405_vm2 = vcmask 523264  }
  0x8c   : > { %v341_v35 = vld [vmem:[#allocation2] sm:$0xff] }
  0x8d   : > { %v441_v36 = vld [vmem:[#allocation2 + $0x1] sm:$0xff]  ;;  %1638 = vmatprep.mubr.msk.f32.mxu1 %vm308_vm0, %v341_v35  ;;  %v1501_v35 = vld [vmem:[%s2588_s3 + $0x98] sm:$0xff] }
  0x8e   : > { %1659 = vmatprep.mubr.msk.f32.mxu0 %vm308_vm0, %v441_v36  ;;  %v1759_v36 = vpack.c.bf16 %v1501_v35, %v1500_v34  ;;  %v1529_v34 = vld [vmem:[%s2588_s3 + $0x168] sm:$0xff] }
  0x90   : > { %v342_v41 = vld [vmem:[#allocation2 + $0x8] sm:$0xff] }
  0x91   : > { %v442_v42 = vld [vmem:[#allocation2 + $0x9] sm:$0xff]  ;;  %1639 = vmatmul.mubr.msk.f32.vlgmr.msra.gmra.mrb[0].mxu1 %vm308_vm0, %v342_v41 }
  0x92   : > { %v536_v43 = vld [vmem:[#allocation2 + $0x2] sm:$0xff]  ;;  %1660 = vmatmul.mubr.msk.f32.vlgmr.msra.gmra.mrb[0].mxu0 %vm308_vm0, %v442_v42  ;;  %v537_v49 = vld [vmem:[#allocation2 + $0xa] sm:$0xff]  ;;  %1733 = vmatpush1.bf16.msra.mxu1 %v1732_v54  ;;  %v1762_v42 = vpack.c.bf16 %v1503_v40, %v1502_v37  ;;  %v1768_v54 = vpack.c.bf16 %v1507_v52, %v1506_v51  ;;  %v1531_v37 = vld [vmem:[%s2588_s3 + $0x178] sm:$0xff] }
  0x93   : > { %1718 = vmatpush3.bf16.msra.mxu0 %v1715_v31  ;;  %1680 = vmatprep.mubr.msk.f32.mxu0 %vm308_vm0, %v536_v43  ;;  %v1504_v43 = vld [vmem:[%s2588_s3 + $0xb0] sm:$0xff]  ;;  %v1533_v40 = vld [vmem:[%s2588_s3 + $0x188] sm:$0xff] }
  0x94   : > { %1720 = vmatprep.subr.bf16.mxu0 %v1719_v38  ;;  %1734 = vmatprep.subr.bf16.mxu1 %v1941_v53  ;;  %v1765_v50 = vpack.c.bf16 %v1505_v46, %v1504_v43  ;;  %v1535_v43 = vld [vmem:[%s2588_s3 + $0x198] sm:$0xff]  ;;  %v1536_v46 = vld [vmem:[%s2588_s3 + $0x1a0] sm:$0xff] }
  0x96   : > { %1736 = vmatpush1.bf16.msra.mxu1 %v1735_v56  ;;  %v1509_v56 = vld [vmem:[%s2588_s3 + $0xd8] sm:$0xff] }
  0x97   : > { %1722 = vmatpush3.bf16.msra.mxu0 %v1719_v38  ;;  %1737 = vmatprep.subr.bf16.mxu1 %v1941_v53  ;;  %v1771_v57 = vpack.c.bf16 %v1509_v56, %v1508_v55 }
  0x98   : > { %1724 = vmatprep.subr.bf16.mxu0 %v1723_v44 }
  0x9a   : > { %1739 = vmatpush1.bf16.msra.mxu1 %v1738_v59  ;;  %v1511_v59 = vld [vmem:[%s2588_s3 + $0xe8] sm:$0xff] }
  0x9b   : > { %1726 = vmatpush3.bf16.msra.mxu0 %v1723_v44  ;;  %1740 = vmatprep.subr.bf16.mxu1 %v1941_v53  ;;  %v1774_v60 = vpack.c.bf16 %v1511_v59, %v1510_v58 }
  0x9c   : > { %1728 = vmatprep.subr.bf16.mxu0 %v1727_v47 }
  0x9e   : > { %1742 = vmatpush1.bf16.msra.mxu1 %v1741_v62  ;;  %v1513_v62 = vld [vmem:[%s2588_s3 + $0xf8] sm:$0xff] }
  0x9f   : > { %1730 = vmatpush3.bf16.msra.mxu0 %v1727_v47  ;;  %1743 = vmatprep.subr.bf16.mxu1 %v1941_v53  ;;  %v1777_v63 = vpack.c.bf16 %v1513_v62, %v1512_v61  ;;  %v1056_v61 = vld [vmem:[%s2590_s5 + $0x10] sm:$0xff] }
  0xa0   : > { %1678 = vmatprep.subr.mxu0 %v1494_v48 }
  0xa2   : > { %1745 = vmatpush1.bf16.msra.mxu1 %v1744_v1  ;;  %v1515_v1 = vld [vmem:[%s2588_s3 + $0x108] sm:$0xff] }
  0xa3   : > { %1679 = vmatpush3.msra.mxu0 %v1494_v48  ;;  %1746 = vmatprep.subr.bf16.mxu1 %v1941_v53  ;;  %v1780_v2 = vpack.c.bf16 %v1515_v1, %v1514_v0  ;;  %v1058_v1 = vld [vmem:[%s2590_s5 + $0x20] sm:$0xff] }
  0xa4   : > { %1681 = vmatmul.mubr.msk.f32.vlgmr.msra.gmra.mrb[0].mxu0 %vm308_vm0, %v537_v49  ;;  %1812 = vmatprep.subr.bf16.mxu0 %v1941_v53 }
  0xa6   : > { %1748 = vmatpush1.bf16.msra.mxu1 %v1747_v4  ;;  %v1517_v4 = vld [vmem:[%s2588_s3 + $0x118] sm:$0xff] }
  0xa7   : > { %1749 = vmatprep.subr.bf16.mxu1 %v1941_v53  ;;  %v1783_v5 = vpack.c.bf16 %v1517_v4, %v1516_v3  ;;  %v1060_v4 = vld [vmem:[%s2590_s5 + $0x30] sm:$0xff] }
  0xaa   : > { %1751 = vmatpush1.bf16.msra.mxu1 %v1750_v7  ;;  %v1520_v7 = vld [vmem:[%s2588_s3 + $0x120] sm:$0xff] }
  0xab   : > { %1752 = vmatprep.subr.bf16.mxu1 %v1941_v53 }
  0xae   : > { %1754 = vmatpush1.bf16.msra.mxu1 %v1753_v13 }
  0xaf   : > { %1755 = vmatprep.subr.bf16.mxu1 %v1941_v53 }
  0xb2   : > { %1757 = vmatpush1.bf16.msra.mxu1 %v1756_v18 }
  0xb3   : > { %1758 = vmatprep.subr.bf16.mxu1 %v1941_v53 }
 0x164   : > { %v1640_v8 = vpop.f32.mrb[0].mxu1 }
 0x165   : > { %v424_v9 = vpop.f32.mrb[1].mxu1  ;;  %v440_v17 = vadd.f32 %v1640_v8, %v1474_v14  ;;  %v1521_v8 = vld [vmem:[%s2588_s3 + $0x128] sm:$0xff] }
 0x166   : > { %v439_v19 = vadd.f32 %v1474_v14, %v424_v9  ;;  %v1786_v13 = vpack.c.bf16 %v1521_v8, %v1520_v7  ;;  %v1062_v7 = vld [vmem:[%s2590_s5 + $0x40] sm:$0xff]  ;;  %v1063_v8 = vld [vmem:[%s2590_s5 + $0x48] sm:$0xff] }
 0x177   : > { %v1682_v11 = vpop.f32.mrb[0].mxu0 }
 0x178   : > { %v1894_v21 = vadd.f32 %v1682_v11, %v440_v17  ;;  %v620_v22 = vpop.f32.mrb[1].mxu0  ;;  %v1523_v17 = vld [vmem:[%s2588_s3 + $0x138] sm:$0xff] }
 0x179   : > { %v1896_v23 = vadd.f32 %v620_v22, %v439_v19 }
 0x17a   : > { %vm632_vm5 = vcmp.ge.f32.partialorder %v1894_v21, 0.0  ;;  %v635_v24 = vmul.f32 %v1894_v21, %v2183_v20 }
 0x17b   : > { %v634_v25 = vmul.f32 %v1896_v23, %v2183_v20  ;;  %vm631_vm6 = vcmp.ge.f32.partialorder %v1896_v23, 0.0 }
 0x17c   : > { %v637_v26 = vsel %vm632_vm5, %v1894_v21, %v635_v24 }
 0x17d   : > { %v642_v27 = vrot.slane %v637_v26, 7  ;;  %v636_v28 = vsel %vm631_vm6, %v1896_v23, %v634_v25  ;;  %v1789_v23 = vpack.c.bf16 %v1523_v17, %v1522_v16  ;;  %v1524_v25 = vld [vmem:[%s2588_s3 + $0x140] sm:$0xff]  ;;  %v1525_v26 = vld [vmem:[%s2588_s3 + $0x148] sm:$0xff]  ;;  %v1068_v17 = vld [vmem:[%s2590_s5 + $0x70] sm:$0xff] }
 0x17e   : > { %v641_v29 = vrot.slane %v636_v28, 7 }
 0x17f   : > { %648 = vrot.lane.b32.xlu0 %v642_v27, %s1942_s25 }
 0x180   : > { %644 = vrot.lane.b32.xlu1 %v641_v29, %s1942_s25  ;;  %v643_v30 = vsel %vm640_vm7, %v641_v29, %v642_v27  ;;  %v1792_v29 = vpack.c.bf16 %v1525_v26, %v1524_v25 }
 0x184   : > { %646 = vrot.lane.b32.xlu1 %v643_v30, %s1942_s25  ;;  %v1526_v30 = vld [vmem:[%s2588_s3 + $0x150] sm:$0xff] }
 0x1f1   : > { %v649_v31 = vpop.permute.xlu0 %648 }
 0x1f2   : > { %662 = vst.msk [vmem:[#allocation3 + $0x20] sm:$0x1] %vm661_vm8, %v649_v31  ;;  %v645_v32 = vpop.permute.xlu1 %644 }
 0x1f3   : > { %664 = vst.msk [vmem:[#allocation3 + $0x28] sm:$0x1] %vm663_vm9, %v649_v31  ;;  %v1527_v31 = vld [vmem:[%s2588_s3 + $0x158] sm:$0xff] }
 0x1f4   : > { %654 = vst.msk [vmem:[#allocation3] sm:$0xfe] %vm653_vm10, %v645_v32 }
 0x1f5   : > { %656 = vst.msk [vmem:[#allocation3 + $0x8] sm:$0xfe] %vm655_vm11, %v645_v32  ;;  %v1795_v32 = vpack.c.bf16 %v1527_v31, %v1526_v30 }
 0x1f6   : > { %v647_v33 = vpop.permute.xlu1 %646 }
 0x1f7   : > { %658 = vst.msk [vmem:[#allocation3 + $0x10] sm:$0xff] %vm657_vm12, %v647_v33 }
 0x1f8   : > { %660 = vst.msk [vmem:[#allocation3 + $0x18] sm:$0xff] %vm659_vm13, %v647_v33  ;;  %v1528_v33 = vld [vmem:[%s2588_s3 + $0x160] sm:$0xff] }
 0x1f9   : > { %v781_v15 = vld [vmem:[#allocation3 + $0x20] sm:$0x1]  ;;  %v1798_v35 = vpack.c.bf16 %v1529_v34, %v1528_v33 }
 0x1fa   : > { %v782_v10 = vld [vmem:[#allocation3 + $0x28] sm:$0x1]  ;;  %v815_v22 = vrot.slane %v781_v15, 1  ;;  %v904_v55 = vld [vmem:[#allocation3 + $0x20] sm:$0x3]  ;;  %v1067_v15 = vld [vmem:[%s2590_s5 + $0x68] sm:$0xff] }
 0x1fb   : > { %v666_v39 = vld [vmem:[#allocation3] sm:$0xff]  ;;  %v817_v14 = vrot.slane %v782_v10, 1  ;;  %v905_v51 = vld [vmem:[#allocation3 + $0x28] sm:$0x3]  ;;  %v936_v58 = vrot.slane %v904_v55, 2  ;;  %v1064_v10 = vld [vmem:[%s2590_s5 + $0x50] sm:$0xff] }
 0x1fc   : > { %v667_v38 = vld [vmem:[#allocation3 + $0x8] sm:$0xff]  ;;  %v777_v6 = vld [vmem:[#allocation3] sm:$0xfe] }
 0x1fd   : > { %1497 = vmatprep.mubr.msk.f32.mxu1 %vm314_vm4, %v667_v38  ;;  %v778_v41 = vld [vmem:[#allocation3 + $0x8] sm:$0xfe]  ;;  %v809_v12 = vrot.slane %v777_v6, 1 }
 0x1fe   : > { %759 = vmatmul.mubr.f32.vlgmr.msra.gmra.mrb[2].mxu1 %v666_v39  ;;  %v2217_v45 = vld [vmem:[#allocation3 + $0x10] sm:$0xff]  ;;  %v812_v47 = vrot.slane %v778_v41, 1  ;;  %v903_v19 = vld [vmem:[#allocation3 + $0x8] sm:$0xfc] }
 0x1ff   : > { %1760 = vmatpush1.bf16.msra.mxu1 %v1759_v36  ;;  %v2214_v44 = vld [vmem:[#allocation3 + $0x18] sm:$0xff]  ;;  %v810_v9 = vrot.slane %v2217_v45, 1  ;;  %v933_v24 = vrot.slane %v903_v19, 2  ;;  %v1532_v39 = vld [vmem:[%s2588_s3 + $0x180] sm:$0xff] }
 0x200   : > { %1761 = vmatprep.subr.bf16.mxu1 %v1941_v53  ;;  %1498 = vmatprep.mubr.msk.f32.mxu1 %vm314_vm4, %v2214_v44  ;;  %v813_v48 = vrot.slane %v2214_v44, 1  ;;  %v934_v21 = vrot.slane %v2214_v44, 2  ;;  %v1530_v36 = vld [vmem:[%s2588_s3 + $0x170] sm:$0xff]  ;;  %v1804_v41 = vpack.c.bf16 %v1533_v40, %v1532_v39  ;;  %v1544_v39 = vld [vmem:[%s2590_s5 + $0x98] sm:$0xff] }
 0x201   : > { %v811_v18 = vsel %vm808_vm14, %v809_v12, %v810_v9  ;;  %v816_v27 = vsel %vm808_vm14, %v810_v9, %v815_v22  ;;  %v1801_v38 = vpack.c.bf16 %v1531_v37, %v1530_v36  ;;  %v1825_v9 = vpack.c.bf16 %v1063_v8, %v1062_v7  ;;  %v1065_v12 = vld [vmem:[%s2590_s5 + $0x58] sm:$0xff]  ;;  %v1071_v22 = vld [vmem:[%s2590_s5 + $0x88] sm:$0xff]  ;;  %v1559_v8 = vld [vmem:[%s2590_s5 + $0x110] sm:$0xff] }
 0x202   : > { %764 = vmatmul.mubr.f32.gmra.mrb[4].mxu1 %v2217_v45  ;;  %v814_v49 = vsel %vm808_vm14, %v812_v47, %v813_v48  ;;  %v818_v11 = vsel %vm808_vm14, %v813_v48, %v817_v14  ;;  %v935_v28 = vsel %vm929_vm15, %v933_v24, %v934_v21  ;;  %v1537_v47 = vld [vmem:[%s2588_s3 + $0x1a8] sm:$0xff]  ;;  %v1066_v14 = vld [vmem:[%s2590_s5 + $0x60] sm:$0xff] }
 0x203   : > { %1763 = vmatpush1.bf16.msra.mxu1 %v1762_v42  ;;  %1518 = vmatprep.mubr.msk.f32.mxu1 %vm314_vm4, %v814_v49  ;;  %v1534_v42 = vld [vmem:[%s2588_s3 + $0x190] sm:$0xff]  ;;  %v1810_v48 = vpack.c.bf16 %v1537_v47, %v1536_v46  ;;  %v902_v49 = vld [vmem:[#allocation3] sm:$0xfc]  ;;  %v1831_v16 = vpack.c.bf16 %v1067_v15, %v1066_v14  ;;  %v1546_v46 = vld [vmem:[%s2590_s5 + $0xa8] sm:$0xff] }
 0x204   : > { %1764 = vmatprep.subr.bf16.mxu1 %v1941_v53  ;;  %v1807_v44 = vpack.c.bf16 %v1535_v43, %v1534_v42  ;;  %v930_v52 = vrot.slane %v902_v49, 2  ;;  %v1545_v42 = vld [vmem:[%s2590_s5 + $0xa0] sm:$0xff]  ;;  %v1547_v49 = vld [vmem:[%s2590_s5 + $0xb0] sm:$0xff]  ;;  %v1564_v15 = vld [vmem:[%s2590_s5 + $0x128] sm:$0xff] }
 0x205   : > { %v1843_v47 = vpack.c.bf16 %v1546_v46, %v1545_v42  ;;  %v1563_v14 = vld [vmem:[%s2590_s5 + $0x120] sm:$0xff] }
 0x207   : > { %1766 = vmatpush1.bf16.msra.mxu1 %v1765_v50  ;;  %v931_v50 = vrot.slane %v2217_v45, 2  ;;  %v1054_v45 = vld [vmem:[%s2590_s5] sm:$0xff] }
 0x208   : > { %1767 = vmatprep.subr.bf16.mxu1 %v1941_v53 }
 0x209   : > { %v932_v56 = vsel %vm929_vm15, %v930_v52, %v931_v50  ;;  %v937_v59 = vsel %vm929_vm15, %v931_v50, %v936_v58  ;;  %v1548_v50 = vld [vmem:[%s2590_s5 + $0xb8] sm:$0xff]  ;;  %v1549_v58 = vld [vmem:[%s2590_s5 + $0xc0] sm:$0xff] }
 0x20b   : > { %1769 = vmatpush1.bf16.msra.mxu1 %v1768_v54  ;;  %v938_v54 = vrot.slane %v905_v51, 2 }
 0x20c   : > { %1770 = vmatprep.subr.bf16.mxu1 %v1941_v53 }
 0x20f   : > { %1772 = vmatpush1.bf16.msra.mxu1 %v1771_v57  ;;  %v939_v57 = vsel %vm929_vm15, %v934_v21, %v938_v54  ;;  %v1070_v21 = vld [vmem:[%s2590_s5 + $0x80] sm:$0xff] }
 0x210   : > { %1773 = vmatprep.subr.bf16.mxu1 %v1941_v53  ;;  %v1837_v24 = vpack.c.bf16 %v1071_v22, %v1070_v21  ;;  %v1565_v21 = vld [vmem:[%s2590_s5 + $0x130] sm:$0xff]  ;;  %v1566_v22 = vld [vmem:[%s2590_s5 + $0x138] sm:$0xff] }
 0x213   : > { %1775 = vmatpush1.bf16.msra.mxu1 %v1774_v60  ;;  %v1055_v60 = vld [vmem:[%s2590_s5 + $0x8] sm:$0xff] }
 0x214   : > { %1776 = vmatprep.subr.bf16.mxu1 %v1941_v53  ;;  %v1813_v62 = vpack.c.bf16 %v1055_v60, %v1054_v45  ;;  %v1551_v60 = vld [vmem:[%s2590_s5 + $0xd0] sm:$0xff] }
 0x216   : > { %1814 = vmatpush1.bf16.msra.mxu0 %v1813_v62 }
 0x217   : > { %1778 = vmatpush1.bf16.msra.mxu1 %v1777_v63  ;;  %v1057_v63 = vld [vmem:[%s2590_s5 + $0x18] sm:$0xff]  ;;  %1815 = vmatprep.subr.bf16.mxu0 %v1941_v53 }
 0x218   : > { %1779 = vmatprep.subr.bf16.mxu1 %v1941_v53  ;;  %v1816_v0 = vpack.c.bf16 %v1057_v63, %v1056_v61  ;;  %v1552_v61 = vld [vmem:[%s2590_s5 + $0xd8] sm:$0xff]  ;;  %v1553_v63 = vld [vmem:[%s2590_s5 + $0xe0] sm:$0xff] }
 0x219   : > { %v1852_v62 = vpack.c.bf16 %v1552_v61, %v1551_v60 }
 0x21a   : > { %1817 = vmatpush1.bf16.msra.mxu0 %v1816_v0  ;;  %v1554_v0 = vld [vmem:[%s2590_s5 + $0xe8] sm:$0xff] }
 0x21b   : > { %1781 = vmatpush1.bf16.msra.mxu1 %v1780_v2  ;;  %v1059_v2 = vld [vmem:[%s2590_s5 + $0x28] sm:$0xff]  ;;  %1818 = vmatprep.subr.bf16.mxu0 %v1941_v53 }
 0x21c   : > { %1782 = vmatprep.subr.bf16.mxu1 %v1941_v53  ;;  %v1819_v3 = vpack.c.bf16 %v1059_v2, %v1058_v1  ;;  %v1855_v1 = vpack.c.bf16 %v1554_v0, %v1553_v63  ;;  %v1555_v2 = vld [vmem:[%s2590_s5 + $0xf0] sm:$0xff] }
 0x21e   : > { %1820 = vmatpush1.bf16.msra.mxu0 %v1819_v3  ;;  %v1556_v3 = vld [vmem:[%s2590_s5 + $0xf8] sm:$0xff] }
 0x21f   : > { %1784 = vmatpush1.bf16.msra.mxu1 %v1783_v5  ;;  %v1061_v5 = vld [vmem:[%s2590_s5 + $0x38] sm:$0xff]  ;;  %1821 = vmatprep.subr.bf16.mxu0 %v1941_v53 }
 0x220   : > { %1785 = vmatprep.subr.bf16.mxu1 %v1941_v53  ;;  %v1822_v6 = vpack.c.bf16 %v1061_v5, %v1060_v4  ;;  %v1858_v4 = vpack.c.bf16 %v1556_v3, %v1555_v2  ;;  %v1557_v5 = vld [vmem:[%s2590_s5 + $0x100] sm:$0xff] }
 0x222   : > { %890 = vmatmul.mubr.f32.vlgmr.msra.gmra.mrb[2].mxu1 %v811_v18  ;;  %1823 = vmatpush1.bf16.msra.mxu0 %v1822_v6  ;;  %v1069_v18 = vld [vmem:[%s2590_s5 + $0x78] sm:$0xff]  ;;  %v1558_v6 = vld [vmem:[%s2590_s5 + $0x108] sm:$0xff] }
 0x223   : > { %1519 = vmatprep.mubr.msk.f32.mxu1 %vm314_vm4, %v818_v11  ;;  %1787 = vmatpush1.bf16.msra.mxu1 %v1786_v13  ;;  %v1828_v13 = vpack.c.bf16 %v1065_v12, %v1064_v10  ;;  %v1834_v19 = vpack.c.bf16 %v1069_v18, %v1068_v17  ;;  %v1499_v11 = vld [vmem:[%s2589_s4] ss:$0 sm:$0xff]  ;;  %v1861_v7 = vpack.c.bf16 %v1558_v6, %v1557_v5 }
 0x224   : > { %1788 = vmatprep.subr.bf16.mxu1 %v1941_v53  ;;  %1824 = vmatprep.subr.bf16.mxu0 %v1941_v53 }
 0x226   : > { %895 = vmatmul.mubr.f32.gmra.mrb[4].mxu1 %v816_v27  ;;  %1826 = vmatpush1.bf16.msra.mxu0 %v1825_v9  ;;  %v1560_v9 = vld [vmem:[%s2590_s5 + $0x118] sm:$0xff] }
 0x227   : > { %1790 = vmatpush1.bf16.msra.mxu1 %v1789_v23  ;;  %1538 = vmatprep.mubr.msk.f32.mxu1 %vm314_vm4, %v935_v28  ;;  %v1864_v10 = vpack.c.bf16 %v1560_v9, %v1559_v8 }
 0x228   : > { %1791 = vmatprep.subr.bf16.mxu1 %v1941_v53  ;;  %1827 = vmatprep.subr.bf16.mxu0 %v1941_v53 }
 0x22a   : > { %1829 = vmatpush1.bf16.msra.mxu0 %v1828_v13 }
 0x22b   : > { %1793 = vmatpush1.bf16.msra.mxu1 %v1792_v29  ;;  %1830 = vmatprep.subr.bf16.mxu0 %v1941_v53 }
 0x22c   : > { %1794 = vmatprep.subr.bf16.mxu1 %v1941_v53 }
 0x22e   : > { %1832 = vmatpush1.bf16.msra.mxu0 %v1831_v16 }
 0x22f   : > { %1796 = vmatpush1.bf16.msra.mxu1 %v1795_v32  ;;  %1833 = vmatprep.subr.bf16.mxu0 %v1941_v53 }
 0x230   : > { %1797 = vmatprep.subr.bf16.mxu1 %v1941_v53 }
 0x232   : > { %1835 = vmatpush1.bf16.msra.mxu0 %v1834_v19 }
 0x233   : > { %1799 = vmatpush1.bf16.msra.mxu1 %v1798_v35  ;;  %1836 = vmatprep.subr.bf16.mxu0 %v1941_v53 }
 0x234   : > { %1800 = vmatprep.subr.bf16.mxu1 %v1941_v53 }
 0x236   : > { %1838 = vmatpush1.bf16.msra.mxu0 %v1837_v24 }
 0x237   : > { %1802 = vmatpush1.bf16.msra.mxu1 %v1801_v38  ;;  %1839 = vmatprep.subr.bf16.mxu0 %v1941_v53 }
 0x238   : > { %1803 = vmatprep.subr.bf16.mxu1 %v1941_v53 }
 0x23b   : > { %1805 = vmatpush1.bf16.msra.mxu1 %v1804_v41 }
 0x23c   : > { %1806 = vmatprep.subr.bf16.mxu1 %v1941_v53 }
 0x23f   : > { %1808 = vmatpush1.bf16.msra.mxu1 %v1807_v44 }
 0x240   : > { %1809 = vmatprep.subr.bf16.mxu1 %v1941_v53 }
 0x243   : > { %1811 = vmatpush1.bf16.msra.mxu1 %v1810_v48 }
 0x246   : > { %1011 = vmatmul.mubr.f32.vlgmr.msra.gmra.mrb[2].mxu1 %v932_v56  ;;  %v1846_v56 = vpack.c.bf16 %v1548_v50, %v1547_v49  ;;  %v1579_v50 = vld [vmem:[%s2590_s5 + $0x1a0] sm:$0xff] }
 0x247   : > { %1539 = vmatprep.mubr.msk.f32.mxu1 %vm314_vm4, %v939_v57 }
 0x24a   : > { %1016 = vmatmul.mubr.f32.gmra.mrb[4].mxu1 %v937_v59  ;;  %v1550_v59 = vld [vmem:[%s2590_s5 + $0xc8] sm:$0xff] }
 0x24b   : > { %v1849_v45 = vpack.c.bf16 %v1550_v59, %v1549_v58 }
 0x319   : > { %v1012_v23 = vpop.f32.mrb[2].mxu1 }
 0x31a   : > { %v1897_v25 = vadd.f32 %v1499_v11, %v1012_v23  ;;  %v1014_v26 = vpop.f32.mrb[3].mxu1 }
 0x31c   : > { %vm1023_vm0 = vcmp.ge.f32.partialorder %v1897_v25, 0.0  ;;  %v1025_v27 = vmul.f32 %v1897_v25, %v2183_v20 }
 0x31d   : > { %v1017_v28 = vpop.f32.mrb[4].mxu1 }
 0x31e   : > { %v1898_v29 = vadd.f32 %v1499_v11, %v1017_v28  ;;  %v1019_v30 = vpop.f32.mrb[5].mxu1  ;;  %v1027_v31 = vsel %vm1023_vm0, %v1897_v25, %v1025_v27  ;;  %v1867_v11 = vpack.c.bf16 %v1564_v15, %v1563_v14  ;;  %v1870_v28 = vpack.c.bf16 %v1566_v22, %v1565_v21 }
 0x31f   : > { %v1031_v32 = vrot.slane %v1027_v31, 7  ;;  %v1567_v30 = vld [vmem:[%s2590_s5 + $0x140] sm:$0xff]  ;;  %v1568_v31 = vld [vmem:[%s2590_s5 + $0x148] sm:$0xff] }
 0x320   : > { %vm1024_vm1 = vcmp.ge.f32.partialorder %v1898_v29, 0.0  ;;  %v1026_v33 = vmul.f32 %v1898_v29, %v2183_v20  ;;  %v1543_v20 = vld [vmem:[%s2590_s5 + $0x90] sm:$0xff] }
 0x321   : > { %1034 = vrot.lane.b32.xlu1 %v1031_v32, %s1942_s25  ;;  %v1840_v41 = vpack.c.bf16 %v1544_v39, %v1543_v20  ;;  %v1572_v20 = vld [vmem:[%s2590_s5 + $0x168] sm:$0xff] }
 0x322   : > { %v1028_v34 = vsel %vm1024_vm1, %v1898_v29, %v1026_v33 }
 0x323   : > { %v1032_v35 = vrot.slane %v1028_v34, 7  ;;  %v1873_v34 = vpack.c.bf16 %v1568_v31, %v1567_v30 }
 0x325   : > { %1038 = vrot.lane.b32.xlu1 %v1032_v35, %s1942_s25  ;;  %v1033_v36 = vsel %vm640_vm7, %v1031_v32, %v1032_v35  ;;  %v1569_v35 = vld [vmem:[%s2590_s5 + $0x150] sm:$0xff] }
 0x326   : > { %1036 = vrot.lane.b32.xlu0 %v1033_v36, %s1942_s25  ;;  %v1570_v36 = vld [vmem:[%s2590_s5 + $0x158] sm:$0xff] }
 0x393   : > { %v1035_v37 = vpop.permute.xlu1 %1034 }
 0x394   : > { %1043 = vst.msk [vmem:[#allocation4] sm:$0xfe] %vm653_vm10, %v1035_v37 }
 0x395   : > { %1044 = vst.msk [vmem:[#allocation4 + $0x8] sm:$0xfe] %vm655_vm11, %v1035_v37  ;;  %v1876_v37 = vpack.c.bf16 %v1570_v36, %v1569_v35 }
 0x397   : > { %v1039_v38 = vpop.permute.xlu1 %1038 }
 0x398   : > { %1047 = vst.msk [vmem:[#allocation4 + $0x20] sm:$0x1] %vm661_vm8, %v1039_v38  ;;  %v1037_v40 = vpop.permute.xlu0 %1036 }
 0x399   : > { %1048 = vst.msk [vmem:[#allocation4 + $0x28] sm:$0x1] %vm663_vm9, %v1039_v38  ;;  %v1571_v38 = vld [vmem:[%s2590_s5 + $0x160] sm:$0xff] }
 0x39a   : > { %1045 = vst.msk [vmem:[#allocation4 + $0x10] sm:$0xff] %vm657_vm12, %v1037_v40  ;;  %v1879_v39 = vpack.c.bf16 %v1572_v20, %v1571_v38 }
 0x39b   : > { %1046 = vst.msk [vmem:[#allocation4 + $0x18] sm:$0xff] %vm659_vm13, %v1037_v40  ;;  %v1050_v44 = vld [vmem:[#allocation4] sm:$0xff]  ;;  %v1573_v40 = vld [vmem:[%s2590_s5 + $0x170] sm:$0xff] }
 0x39c   : > { %v1051_v43 = vld [vmem:[#allocation4 + $0x8] sm:$0xff]  ;;  %v1161_v13 = vld [vmem:[#allocation4] sm:$0xfe] }
 0x39d   : > { %1540 = vmatprep.mubr.msk.f32.mxu0 %vm314_vm4, %v1051_v43  ;;  %v1162_v48 = vld [vmem:[#allocation4 + $0x8] sm:$0xfe]  ;;  %v1192_v19 = vrot.slane %v1161_v13, 1  ;;  %v1575_v43 = vld [vmem:[%s2590_s5 + $0x180] sm:$0xff] }
 0x39e   : > { %1143 = vmatmul.mubr.f32.vlgmr.msra.gmra.mrb[2].mxu0 %v1050_v44  ;;  %v1195_v54 = vrot.slane %v1162_v48, 1  ;;  %v1286_v25 = vld [vmem:[#allocation4 + $0x8] sm:$0xfc]  ;;  %v1576_v44 = vld [vmem:[%s2590_s5 + $0x188] sm:$0xff]  ;;  %v1578_v48 = vld [vmem:[%s2590_s5 + $0x198] sm:$0xff] }
 0x39f   : > { %1841 = vmatpush1.bf16.msra.mxu0 %v1840_v41  ;;  %v1165_v18 = vld [vmem:[#allocation4 + $0x20] sm:$0x1]  ;;  %v1315_v29 = vrot.slane %v1286_v25, 2  ;;  %v1574_v41 = vld [vmem:[%s2590_s5 + $0x178] sm:$0xff]  ;;  %v1885_v46 = vpack.c.bf16 %v1576_v44, %v1575_v43 }
 0x3a0   : > { %1842 = vmatprep.subr.bf16.mxu0 %v1941_v53  ;;  %v1166_v12 = vld [vmem:[#allocation4 + $0x28] sm:$0x1]  ;;  %v1198_v24 = vrot.slane %v1165_v18, 1  ;;  %v1882_v42 = vpack.c.bf16 %v1574_v41, %v1573_v40  ;;  %v1287_v59 = vld [vmem:[#allocation4 + $0x20] sm:$0x3] }
 0x3a1   : > { %v2447_v52 = vld [vmem:[#allocation4 + $0x10] sm:$0xff]  ;;  %v1200_v17 = vrot.slane %v1166_v12, 1  ;;  %v1318_v61 = vrot.slane %v1287_v59, 2 }
 0x3a2   : > { %v2445_v51 = vld [vmem:[#allocation4 + $0x18] sm:$0xff]  ;;  %v1193_v16 = vrot.slane %v2447_v52, 1 }
 0x3a3   : > { %1541 = vmatprep.mubr.msk.f32.mxu0 %vm314_vm4, %v2445_v51  ;;  %v1196_v55 = vrot.slane %v2445_v51, 1  ;;  %1844 = vmatpush1.bf16.msra.mxu0 %v1843_v47  ;;  %v1316_v27 = vrot.slane %v2445_v51, 2  ;;  %v1577_v47 = vld [vmem:[%s2590_s5 + $0x190] sm:$0xff]  ;;  %v1580_v51 = vld [vmem:[%s2590_s5 + $0x1a8] sm:$0xff] }
 0x3a4   : > { %1148 = vmatmul.mubr.f32.gmra.mrb[4].mxu0 %v2447_v52  ;;  %1845 = vmatprep.subr.bf16.mxu0 %v1941_v53  ;;  %v1194_v23 = vsel %vm808_vm14, %v1192_v19, %v1193_v16  ;;  %v1199_v32 = vsel %vm808_vm14, %v1193_v16, %v1198_v24  ;;  %v1888_v49 = vpack.c.bf16 %v1578_v48, %v1577_v47 }
 0x3a5   : > { %v1197_v57 = vsel %vm808_vm14, %v1195_v54, %v1196_v55  ;;  %v1201_v26 = vsel %vm808_vm14, %v1196_v55, %v1200_v17  ;;  %v1317_v33 = vsel %vm929_vm15, %v1315_v29, %v1316_v27  ;;  %v1891_v54 = vpack.c.bf16 %v1580_v51, %v1579_v50  ;;  %v1288_v55 = vld [vmem:[#allocation4 + $0x28] sm:$0x3] }
 0x3a6   : > { %1561 = vmatprep.mubr.msk.f32.mxu0 %vm314_vm4, %v1197_v57  ;;  %v1313_v57 = vrot.slane %v2447_v52, 2  ;;  %v1320_v58 = vrot.slane %v1288_v55, 2 }
 0x3a7   : > { %1847 = vmatpush1.bf16.msra.mxu0 %v1846_v56  ;;  %v1285_v56 = vld [vmem:[#allocation4] sm:$0xfc] }
 0x3a8   : > { %1848 = vmatprep.subr.bf16.mxu0 %v1941_v53  ;;  %v1319_v63 = vsel %vm929_vm15, %v1313_v57, %v1318_v61 }
 0x3ab   : > { %1850 = vmatpush1.bf16.msra.mxu0 %v1849_v45  ;;  %v1312_v45 = vrot.slane %v1285_v56, 2 }
 0x3ac   : > { %1851 = vmatprep.subr.bf16.mxu0 %v1941_v53 }
 0x3ad   : > { %v1314_v60 = vsel %vm929_vm15, %v1312_v45, %v1313_v57 }
 0x3af   : > { %1853 = vmatpush1.bf16.msra.mxu0 %v1852_v62  ;;  %v1321_v62 = vsel %vm929_vm15, %v1316_v27, %v1320_v58 }
 0x3b0   : > { %1854 = vmatprep.subr.bf16.mxu0 %v1941_v53 }
 0x3b3   : > { %1856 = vmatpush1.bf16.msra.mxu0 %v1855_v1 }
 0x3b4   : > { %1857 = vmatprep.subr.bf16.mxu0 %v1941_v53 }
 0x3b7   : > { %1859 = vmatpush1.bf16.msra.mxu0 %v1858_v4 }
 0x3b8   : > { %1860 = vmatprep.subr.bf16.mxu0 %v1941_v53 }
 0x3bb   : > { %1862 = vmatpush1.bf16.msra.mxu0 %v1861_v7 }
 0x3bc   : > { %1863 = vmatprep.subr.bf16.mxu0 %v1941_v53 }
 0x3bf   : > { %1865 = vmatpush1.bf16.msra.mxu0 %v1864_v10 }
 0x3c0   : > { %1866 = vmatprep.subr.bf16.mxu0 %v1941_v53 }
 0x3c2   : > { %1273 = vmatmul.mubr.f32.vlgmr.msra.gmra.mrb[2].mxu0 %v1194_v23 }
 0x3c3   : > { %1562 = vmatprep.mubr.msk.f32.mxu0 %vm314_vm4, %v1201_v26  ;;  %1868 = vmatpush1.bf16.msra.mxu0 %v1867_v11 }
 0x3c4   : > { %1869 = vmatprep.subr.bf16.mxu0 %v1941_v53 }
 0x3c6   : > { %1278 = vmatmul.mubr.f32.gmra.mrb[4].mxu0 %v1199_v32 }
 0x3c7   : > { %1871 = vmatpush1.bf16.msra.mxu0 %v1870_v28  ;;  %1581 = vmatprep.mubr.msk.f32.mxu0 %vm314_vm4, %v1317_v33 }
 0x3c8   : > { %1872 = vmatprep.subr.bf16.mxu0 %v1941_v53 }
 0x3cb   : > { %1874 = vmatpush1.bf16.msra.mxu0 %v1873_v34 }
 0x3cc   : > { %1875 = vmatprep.subr.bf16.mxu0 %v1941_v53 }
 0x3cf   : > { %1877 = vmatpush1.bf16.msra.mxu0 %v1876_v37 }
 0x3d0   : > { %1878 = vmatprep.subr.bf16.mxu0 %v1941_v53 }
 0x3d3   : > { %1880 = vmatpush1.bf16.msra.mxu0 %v1879_v39 }
 0x3d4   : > { %1881 = vmatprep.subr.bf16.mxu0 %v1941_v53 }
 0x3d7   : > { %1883 = vmatpush1.bf16.msra.mxu0 %v1882_v42 }
 0x3d8   : > { %1884 = vmatprep.subr.bf16.mxu0 %v1941_v53 }
 0x3db   : > { %1886 = vmatpush1.bf16.msra.mxu0 %v1885_v46 }
 0x3dc   : > { %1887 = vmatprep.subr.bf16.mxu0 %v1941_v53 }
 0x3df   : > { %1889 = vmatpush1.bf16.msra.mxu0 %v1888_v49 }
 0x3e0   : > { %1890 = vmatprep.subr.bf16.mxu0 %v1941_v53  ;;  %v1542_v53 = vld [vmem:[%s2591_s6] ss:$0 sm:$0xff] }
 0x3e3   : > { %1892 = vmatpush1.bf16.msra.mxu0 %v1891_v54 }
 0x3e6   : > { %1393 = vmatmul.mubr.f32.vlgmr.msra.gmra.mrb[2].mxu0 %v1314_v60 }
 0x3e7   : > { %1582 = vmatprep.mubr.msk.f32.mxu0 %vm314_vm4, %v1321_v62 }
 0x3ea   : > { %1398 = vmatmul.mubr.f32.gmra.mrb[4].mxu0 %v1319_v63 }
 0x4b9   : > { %v1394_v52 = vpop.f32.mrb[2].mxu0 }
 0x4ba   : > { %v1899_v0 = vadd.f32 %v1542_v53, %v1394_v52  ;;  %v1396_v1 = vpop.f32.mrb[3].mxu0 }
 0x4bc   : > { %1406 = vst.msk [vmem:[%s306_s17] sm:$0xff] %vm1405_vm2, %v1899_v0 }
 0x4bd   : > { %v1399_v2 = vpop.f32.mrb[4].mxu0 }
 0x4be   : > { %v1900_v3 = vadd.f32 %v1542_v53, %v1399_v2  ;;  %v1401_v4 = vpop.f32.mrb[5].mxu0 }
 0x4c0   : > { %1407 = vst.msk [vmem:[%s306_s17 + $0x8] sm:$0xff] %vm1405_vm2, %v1900_v3 }
 0x4c1 PF: > { %s19_s29 = sadd.s32 1, %s1937_s29  }
 0x4c2   : > { %p16_p4 = scmp.ge.s32.totalorder %s19_s29, 4  }
 0x4c4   :  { %18 = sbr.rel (!%p16_p4) target bundleno = 2 (0x2), region = 88 }

</bundles_post_ra>
